<compile_context>
chip_gen: v7x
topology: tpu7x:2x2x1
jax: 0.10.0
libtpu: 0.0.40
codegen_flags: <defaults>
</compile_context>

<pallas_src>
import math
import jax
import jax.numpy as jnp
import numpy as np
from jax.experimental import pallas as pl
from jax.experimental.pallas import tpu as pltpu


def _make_kernel(num_heads: int, head_dim_qk: int, head_dim_v: int,
                 attn_scale: float, ln_eps: float, compute_dtype):
    def kernel(x_ref, wqT_ref, bq_ref, wkT_ref, bk_ref, wvT_ref, bv_ref,
               woT_ref, bo_ref, gamma_ref, beta_ref,
               out_ref, attn_ref, ctx_ref):
        # x_ref block: (1, S, D) -> per-batch tile
        x_f32 = x_ref[0].astype(jnp.float32)            # residual / LN path (f32)
        x_mm = x_f32.astype(compute_dtype)              # matmul path (bf16)

        # QKV projections: weights already stored (in, out) -> no transpose.
        q = jnp.dot(x_mm, wqT_ref[...], preferred_element_type=jnp.float32) + bq_ref[...]
        k = jnp.dot(x_mm, wkT_ref[...], preferred_element_type=jnp.float32) + bk_ref[...]
        v = jnp.dot(x_mm, wvT_ref[...], preferred_element_type=jnp.float32) + bv_ref[...]

        # Fold the 1/sqrt(head_dim) scale into q once (S*Dk elems vs H*S*S).
        q = q * attn_scale

        q = q.astype(compute_dtype)
        k = k.astype(compute_dtype)
        v = v.astype(compute_dtype)

        for h in range(num_heads):                       # static, unrolled
            sq = slice(h * head_dim_qk, (h + 1) * head_dim_qk)
            sv = slice(h * head_dim_v, (h + 1) * head_dim_v)
            q_h = q[:, sq]                               # (S, hd_qk) static slices
            k_h = k[:, sq]
            v_h = v[:, sv]                               # (S, hd_v)

            # 'nt' contraction -- no k_h.T materialization.
            scores = jnp.einsum("qd,kd->qk", q_h, k_h,
                                preferred_element_type=jnp.float32)   # (S, S) f32

            # softmax over keys (f32), divide replaced by EUP reciprocal
            m = jnp.max(scores, axis=-1, keepdims=True)
            e = jnp.exp(scores - m)
            denom = jnp.sum(e, axis=-1, keepdims=True)
            probs = e * pl.reciprocal(denom, approx=True)

            attn_ref[0, h] = probs.astype(attn_ref.dtype)

            # attn_drop is identity (eval mode)
            ctx_h = jnp.dot(probs.astype(compute_dtype), v_h,
                            preferred_element_type=jnp.float32)       # (S, hd_v)
            ctx_ref[:, sv] = ctx_h                       # scratch slice write, no concat

        # Output projection (single full-width matmul) + residual.
        out = jnp.dot(ctx_ref[...].astype(compute_dtype), woT_ref[...],
                      preferred_element_type=jnp.float32) + bo_ref[...]
        # drop is identity (eval mode)
        res = out + x_f32                                # (S, D)

        # LayerNorm over last dim (biased variance, eps inside sqrt), f32.
        mean = jnp.mean(res, axis=-1, keepdims=True)
        cen = res - mean
        var = jnp.mean(cen * cen, axis=-1, keepdims=True)
        y = cen * jax.lax.rsqrt(var + ln_eps) * gamma_ref[...] + beta_ref[...]

        out_ref[0] = y.astype(out_ref.dtype)

    return kernel


def post_norm_self_attention(hidden, params, *, num_heads, attn_dtype=None,
                             matmul_dtype=jnp.bfloat16, ln_eps=1e-5):
    """hidden: (B, S, D). Returns (output (B,S,D), attn (B,H,S,S))."""
    B, S, D = hidden.shape
    Dk = params["wq"].shape[0]
    head_dim_qk = Dk // num_heads
    head_dim_v = D // num_heads
    attn_scale = math.sqrt(1.0 / head_dim_qk)
    attn_dtype = hidden.dtype if attn_dtype is None else attn_dtype

    # Pre-transpose to (in, out) and pre-cast matmul operands once, wrapper-side.
    wqT = params["wq"].T.astype(matmul_dtype)     # (D, Dk)
    wkT = params["wk"].T.astype(matmul_dtype)     # (D, Dk)
    wvT = params["wv"].T.astype(matmul_dtype)     # (D, D)
    woT = params["wo"].T.astype(matmul_dtype)     # (D, D)
    bq = params["bq"].astype(jnp.float32)
    bk = params["bk"].astype(jnp.float32)
    bv = params["bv"].astype(jnp.float32)
    bo = params["bo"].astype(jnp.float32)
    gamma = params["gamma"].astype(jnp.float32)
    beta = params["beta"].astype(jnp.float32)

    kernel = _make_kernel(num_heads, head_dim_qk, head_dim_v, attn_scale,
                          ln_eps, matmul_dtype)

    out_shape = (
        jax.ShapeDtypeStruct((B, S, D), hidden.dtype),
        jax.ShapeDtypeStruct((B, num_heads, S, S), attn_dtype),
    )

    operands = (hidden, wqT, bq, wkT, bk, wvT, bv, woT, bo, gamma, beta)

    # Advisory cost estimate so XLA can schedule around the custom call.
    flops = int(2 * B * S * D * (2 * Dk + 2 * D)          # q/k/v/out projections
                + 2 * B * S * S * (Dk + D))               # QK^T and probs@V over heads
    transcendentals = int(B * num_heads * S * S + B * S * (num_heads + 1))
    bytes_accessed = int(
        sum(int(np.prod(a.shape)) * a.dtype.itemsize for a in operands)
        + B * S * D * jnp.dtype(hidden.dtype).itemsize
        + B * num_heads * S * S * jnp.dtype(attn_dtype).itemsize)
    cost = pl.CostEstimate(flops=flops, transcendentals=transcendentals,
                           bytes_accessed=bytes_accessed)

    def run(single_buffer_params: bool):
        if single_buffer_params:
            # Constant-index params: double buffering is pure VMEM waste.
            def const_spec(shape):
                return pl.BlockSpec(shape, lambda b: (0,) * len(shape),
                                    pipeline_mode=pl.Buffered(1))
        else:
            def const_spec(shape):
                return pl.BlockSpec(shape, lambda b: (0,) * len(shape))

        grid_spec = pltpu.PrefetchScalarGridSpec(
            num_scalar_prefetch=0,
            grid=(B,),
            in_specs=[
                pl.BlockSpec((1, S, D), lambda b: (b, 0, 0)),      # hidden
                const_spec((D, Dk)),                               # wq^T
                const_spec((1, Dk)),                               # bq
                const_spec((D, Dk)),                               # wk^T
                const_spec((1, Dk)),                               # bk
                const_spec((D, D)),                                # wv^T
                const_spec((1, D)),                                # bv
                const_spec((D, D)),                                # wo^T
                const_spec((1, D)),                                # bo
                const_spec((1, D)),                                # ln gamma
                const_spec((1, D)),                                # ln beta
            ],
            out_specs=[
                pl.BlockSpec((1, S, D), lambda b: (b, 0, 0)),
                pl.BlockSpec((1, num_heads, S, S), lambda b: (b, 0, 0, 0)),
            ],
            scratch_shapes=[pltpu.VMEM((S, D), jnp.float32)],      # ctx accumulator
        )
        return pl.pallas_call(
            kernel,
            out_shape=out_shape,
            grid_spec=grid_spec,
            compiler_params=pltpu.CompilerParams(
                dimension_semantics=("parallel",),
                vmem_limit_bytes=32 * 1024 * 1024,
            ),
            cost_estimate=cost,
        )(*operands)

    try:
        return run(True)
    except Exception:
        # pl.Buffered(1) not accepted by this jax/libtpu -> default buffering.
        return run(False)


def reference(hidden, params, *, num_heads):
    """Pure-JAX f32 reference matching the PyTorch module (eval mode)."""
    B, S, D = hidden.shape
    Dk = params["wq"].shape[0]
    hd_qk = Dk // num_heads
    hd_v = D // num_heads
    scale = math.sqrt(1.0 / hd_qk)

    q = hidden @ params["wq"].T + params["bq"][0]
    k = hidden @ params["wk"].T + params["bk"][0]
    v = hidden @ params["wv"].T + params["bv"][0]

    def split(x, hd):
        return x.reshape(B, S, num_heads, hd).transpose(0, 2, 1, 3)

    qh, kh, vh = split(q, hd_qk), split(k, hd_qk), split(v, hd_v)
    attn = jnp.einsum("bhqd,bhkd->bhqk", qh, kh) * scale
    attn = jax.nn.softmax(attn, axis=-1)
    ctx = jnp.einsum("bhqk,bhkd->bhqd", attn, vh)
    ctx = ctx.transpose(0, 2, 1, 3).reshape(B, S, D)
    out = ctx @ params["wo"].T + params["bo"][0]
    res = out + hidden
    mean = res.mean(-1, keepdims=True)
    var = ((res - mean) ** 2).mean(-1, keepdims=True)
    y = (res - mean) / jnp.sqrt(var + 1e-5) * params["gamma"][0] + params["beta"][0]
    return y, attn


if __name__ == "__main__":
    # Small shapes consistent with the module's forward:
    B, S = 2, 8            # batch, num_patches
    D = 32                 # hidden_dim
    Dk = 32                # key_query_dim
    H = 4                  # num_heads

    key = jax.random.PRNGKey(0)
    ks = jax.random.split(key, 10)
    scale = 0.05
    params = {
        "wq": scale * jax.random.normal(ks[0], (Dk, D), jnp.float32),
        "bq": scale * jax.random.normal(ks[1], (1, Dk), jnp.float32),
        "wk": scale * jax.random.normal(ks[2], (Dk, D), jnp.float32),
        "bk": scale * jax.random.normal(ks[3], (1, Dk), jnp.float32),
        "wv": scale * jax.random.normal(ks[4], (D, D), jnp.float32),
        "bv": scale * jax.random.normal(ks[5], (1, D), jnp.float32),
        "wo": scale * jax.random.normal(ks[6], (D, D), jnp.float32),
        "bo": scale * jax.random.normal(ks[7], (1, D), jnp.float32),
        "gamma": jnp.ones((1, D), jnp.float32),
        "beta": jnp.zeros((1, D), jnp.float32),
    }
    hidden = jax.random.normal(ks[8], (B, S, D), jnp.float32)

    out, attn = post_norm_self_attention(hidden, params, num_heads=H)
    out = jax.block_until_ready(out)
    attn = jax.block_until_ready(attn)

    out_ref, attn_ref = reference(hidden, params, num_heads=H)
    # bf16 matmul inputs + approx reciprocal vs pure-f32 reference -> ~1e-2 tol.
    np.testing.assert_allclose(np.asarray(out), np.asarray(out_ref), rtol=1e-2, atol=1e-2)
    np.testing.assert_allclose(np.asarray(attn), np.asarray(attn_ref), rtol=1e-2, atol=1e-2)

    print("KERNEL_OK")
</pallas_src>

<mosaic_0001>
module attributes {stable_mosaic.version = 11 : i64} {
  func.func @kernel(%arg0: i32, %arg1: memref<1x8x32xf32, #tpu.memory_space<vmem>>, %arg2: memref<32x32xbf16, #tpu.memory_space<vmem>>, %arg3: memref<1x32xf32, #tpu.memory_space<vmem>>, %arg4: memref<32x32xbf16, #tpu.memory_space<vmem>>, %arg5: memref<1x32xf32, #tpu.memory_space<vmem>>, %arg6: memref<32x32xbf16, #tpu.memory_space<vmem>>, %arg7: memref<1x32xf32, #tpu.memory_space<vmem>>, %arg8: memref<32x32xbf16, #tpu.memory_space<vmem>>, %arg9: memref<1x32xf32, #tpu.memory_space<vmem>>, %arg10: memref<1x32xf32, #tpu.memory_space<vmem>>, %arg11: memref<1x32xf32, #tpu.memory_space<vmem>>, %arg12: memref<1x8x32xf32, #tpu.memory_space<vmem>>, %arg13: memref<1x4x8x8xf32, #tpu.memory_space<vmem>>, %arg14: memref<8x32xf32, #tpu.memory_space<vmem>>) attributes {dimension_semantics = [#tpu.dimension_semantics<parallel>], iteration_bounds = array<i64: 2>, scalar_prefetch = 0 : i64, scratch_operands = 1 : i64, tpu.core_type = #tpu.core_type<tc>, window_params = [{transform_indices = @transform_0, window_bounds = array<i64: 1, 8, 32>}, {pipeline_mode = #tpu.pipeline_mode<synchronous>, transform_indices = @transform_1, window_bounds = array<i64: 32, 32>}, {pipeline_mode = #tpu.pipeline_mode<synchronous>, transform_indices = @transform_2, window_bounds = array<i64: 1, 32>}, {pipeline_mode = #tpu.pipeline_mode<synchronous>, transform_indices = @transform_3, window_bounds = array<i64: 32, 32>}, {pipeline_mode = #tpu.pipeline_mode<synchronous>, transform_indices = @transform_4, window_bounds = array<i64: 1, 32>}, {pipeline_mode = #tpu.pipeline_mode<synchronous>, transform_indices = @transform_5, window_bounds = array<i64: 32, 32>}, {pipeline_mode = #tpu.pipeline_mode<synchronous>, transform_indices = @transform_6, window_bounds = array<i64: 1, 32>}, {pipeline_mode = #tpu.pipeline_mode<synchronous>, transform_indices = @transform_7, window_bounds = array<i64: 32, 32>}, {pipeline_mode = #tpu.pipeline_mode<synchronous>, transform_indices = @transform_8, window_bounds = array<i64: 1, 32>}, {pipeline_mode = #tpu.pipeline_mode<synchronous>, transform_indices = @transform_9, window_bounds = array<i64: 1, 32>}, {pipeline_mode = #tpu.pipeline_mode<synchronous>, transform_indices = @transform_10, window_bounds = array<i64: 1, 32>}, {transform_indices = @transform_11, window_bounds = array<i64: 1, 8, 32>}, {transform_indices = @transform_12, window_bounds = array<i64: 1, 4, 8, 8>}]} {
    %c0 = arith.constant 0 : index
    %c0_0 = arith.constant 0 : index
    %c0_1 = arith.constant 0 : index
    %0 = vector.load %arg1[%c0, %c0_0, %c0_1] : memref<1x8x32xf32, #tpu.memory_space<vmem>>, vector<1x8x32xf32>
    %1 = vector.shape_cast %0 : vector<1x8x32xf32> to vector<8x32xf32>
    %2 = arith.truncf %1 : vector<8x32xf32> to vector<8x32xbf16>
    %c0_2 = arith.constant 0 : index
    %c0_3 = arith.constant 0 : index
    %3 = vector.load %arg2[%c0_2, %c0_3] : memref<32x32xbf16, #tpu.memory_space<vmem>>, vector<32x32xbf16>
    %cst = arith.constant dense<0.000000e+00> : vector<8x32xf32>
    %4 = tpu.matmul %2, %3, %cst {dimension_numbers = #tpu.dot_dimension_numbers<[1], [0], [0], [1], [0, 0, 1, 1], [], []>} : vector<8x32xbf16>, vector<32x32xbf16>, vector<8x32xf32> -> vector<8x32xf32>
    %c0_4 = arith.constant 0 : index
    %c0_5 = arith.constant 0 : index
    %5 = vector.load %arg3[%c0_4, %c0_5] : memref<1x32xf32, #tpu.memory_space<vmem>>, vector<1x32xf32>
    %6 = vector.broadcast %5 : vector<1x32xf32> to vector<8x32xf32>
    %7 = arith.addf %4, %6 : vector<8x32xf32>
    %c0_6 = arith.constant 0 : index
    %c0_7 = arith.constant 0 : index
    %8 = vector.load %arg4[%c0_6, %c0_7] : memref<32x32xbf16, #tpu.memory_space<vmem>>, vector<32x32xbf16>
    %cst_8 = arith.constant dense<0.000000e+00> : vector<8x32xf32>
    %9 = tpu.matmul %2, %8, %cst_8 {dimension_numbers = #tpu.dot_dimension_numbers<[1], [0], [0], [1], [0, 0, 1, 1], [], []>} : vector<8x32xbf16>, vector<32x32xbf16>, vector<8x32xf32> -> vector<8x32xf32>
    %c0_9 = arith.constant 0 : index
    %c0_10 = arith.constant 0 : index
    %10 = vector.load %arg5[%c0_9, %c0_10] : memref<1x32xf32, #tpu.memory_space<vmem>>, vector<1x32xf32>
    %11 = vector.broadcast %10 : vector<1x32xf32> to vector<8x32xf32>
    %12 = arith.addf %9, %11 : vector<8x32xf32>
    %c0_11 = arith.constant 0 : index
    %c0_12 = arith.constant 0 : index
    %13 = vector.load %arg6[%c0_11, %c0_12] : memref<32x32xbf16, #tpu.memory_space<vmem>>, vector<32x32xbf16>
    %cst_13 = arith.constant dense<0.000000e+00> : vector<8x32xf32>
    %14 = tpu.matmul %2, %13, %cst_13 {dimension_numbers = #tpu.dot_dimension_numbers<[1], [0], [0], [1], [0, 0, 1, 1], [], []>} : vector<8x32xbf16>, vector<32x32xbf16>, vector<8x32xf32> -> vector<8x32xf32>
    %c0_14 = arith.constant 0 : index
    %c0_15 = arith.constant 0 : index
    %15 = vector.load %arg7[%c0_14, %c0_15] : memref<1x32xf32, #tpu.memory_space<vmem>>, vector<1x32xf32>
    %16 = vector.broadcast %15 : vector<1x32xf32> to vector<8x32xf32>
    %17 = arith.addf %14, %16 : vector<8x32xf32>
    %cst_16 = arith.constant 0.353553385 : f32
    %18 = vector.broadcast %cst_16 : f32 to vector<8x32xf32>
    %19 = arith.mulf %7, %18 : vector<8x32xf32>
    %20 = arith.truncf %19 : vector<8x32xf32> to vector<8x32xbf16>
    %21 = arith.truncf %12 : vector<8x32xf32> to vector<8x32xbf16>
    %22 = arith.truncf %17 : vector<8x32xf32> to vector<8x32xbf16>
    %23 = vector.extract_strided_slice %20 {offsets = [0, 0], sizes = [8, 8], strides = [1, 1]} : vector<8x32xbf16> to vector<8x8xbf16>
    %24 = vector.extract_strided_slice %21 {offsets = [0, 0], sizes = [8, 8], strides = [1, 1]} : vector<8x32xbf16> to vector<8x8xbf16>
    %25 = vector.extract_strided_slice %22 {offsets = [0, 0], sizes = [8, 8], strides = [1, 1]} : vector<8x32xbf16> to vector<8x8xbf16>
    "tpu.trace_start"() <{level = 10 : i32, message = "qd,kd->qk"}> : () -> ()
    %cst_17 = arith.constant dense<0.000000e+00> : vector<8x8xf32>
    %26 = tpu.matmul %23, %24, %cst_17 {dimension_numbers = #tpu.dot_dimension_numbers<[1], [1], [0], [0], [0, 0, 1, 0], [], []>} : vector<8x8xbf16>, vector<8x8xbf16>, vector<8x8xf32> -> vector<8x8xf32>
    "tpu.trace_stop"() : () -> ()
    %cst_18 = arith.constant dense<0xFF800000> : vector<8xf32>
    %27 = vector.multi_reduction <maximumf>, %26, %cst_18 [1] : vector<8x8xf32> to vector<8xf32>
    %28 = vector.shape_cast %27 : vector<8xf32> to vector<8x1xf32>
    %29 = vector.broadcast %28 : vector<8x1xf32> to vector<8x8xf32>
    %30 = arith.subf %26, %29 : vector<8x8xf32>
    %31 = math.exp %30 : vector<8x8xf32>
    %cst_19 = arith.constant dense<0.000000e+00> : vector<8xf32>
    %32 = vector.multi_reduction <add>, %31, %cst_19 [1] : vector<8x8xf32> to vector<8xf32>
    %33 = vector.shape_cast %32 : vector<8xf32> to vector<8x1xf32>
    %34 = tpu.reciprocal %33 {approx = true} : vector<8x1xf32> -> vector<8x1xf32>
    %35 = vector.broadcast %34 : vector<8x1xf32> to vector<8x8xf32>
    %36 = arith.mulf %31, %35 : vector<8x8xf32>
    %c0_20 = arith.constant 0 : index
    %c0_21 = arith.constant 0 : index
    %c0_22 = arith.constant 0 : index
    %c0_23 = arith.constant 0 : index
    %37 = vector.load %arg13[%c0_20, %c0_21, %c0_22, %c0_23] : memref<1x4x8x8xf32, #tpu.memory_space<vmem>>, vector<1x1x8x8xf32>
    %38 = vector.shape_cast %37 : vector<1x1x8x8xf32> to vector<8x8xf32>
    %39 = vector.shape_cast %36 : vector<8x8xf32> to vector<1x1x8x8xf32>
    tpu.vector_store %arg13[%c0_20, %c0_21, %c0_22, %c0_23], %39 {strides = array<i32>} : memref<1x4x8x8xf32, #tpu.memory_space<vmem>>, vector<1x1x8x8xf32>,
    %40 = arith.truncf %36 : vector<8x8xf32> to vector<8x8xbf16>
    %cst_24 = arith.constant dense<0.000000e+00> : vector<8x8xf32>
    %41 = tpu.matmul %40, %25, %cst_24 {dimension_numbers = #tpu.dot_dimension_numbers<[1], [0], [0], [1], [0, 0, 1, 1], [], []>} : vector<8x8xbf16>, vector<8x8xbf16>, vector<8x8xf32> -> vector<8x8xf32>
    %c0_25 = arith.constant 0 : index
    %c0_26 = arith.constant 0 : index
    %42 = vector.load %arg14[%c0_25, %c0_26] : memref<8x32xf32, #tpu.memory_space<vmem>>, vector<8x8xf32>
    tpu.vector_store %arg14[%c0_25, %c0_26], %41 {strides = array<i32>} : memref<8x32xf32, #tpu.memory_space<vmem>>, vector<8x8xf32>,
    %43 = vector.extract_strided_slice %20 {offsets = [0, 8], sizes = [8, 8], strides = [1, 1]} : vector<8x32xbf16> to vector<8x8xbf16>
    %44 = vector.extract_strided_slice %21 {offsets = [0, 8], sizes = [8, 8], strides = [1, 1]} : vector<8x32xbf16> to vector<8x8xbf16>
    %45 = vector.extract_strided_slice %22 {offsets = [0, 8], sizes = [8, 8], strides = [1, 1]} : vector<8x32xbf16> to vector<8x8xbf16>
    "tpu.trace_start"() <{level = 10 : i32, message = "qd,kd->qk"}> : () -> ()
    %cst_27 = arith.constant dense<0.000000e+00> : vector<8x8xf32>
    %46 = tpu.matmul %43, %44, %cst_27 {dimension_numbers = #tpu.dot_dimension_numbers<[1], [1], [0], [0], [0, 0, 1, 0], [], []>} : vector<8x8xbf16>, vector<8x8xbf16>, vector<8x8xf32> -> vector<8x8xf32>
    "tpu.trace_stop"() : () -> ()
    %cst_28 = arith.constant dense<0xFF800000> : vector<8xf32>
    %47 = vector.multi_reduction <maximumf>, %46, %cst_28 [1] : vector<8x8xf32> to vector<8xf32>
    %48 = vector.shape_cast %47 : vector<8xf32> to vector<8x1xf32>
    %49 = vector.broadcast %48 : vector<8x1xf32> to vector<8x8xf32>
    %50 = arith.subf %46, %49 : vector<8x8xf32>
    %51 = math.exp %50 : vector<8x8xf32>
    %cst_29 = arith.constant dense<0.000000e+00> : vector<8xf32>
    %52 = vector.multi_reduction <add>, %51, %cst_29 [1] : vector<8x8xf32> to vector<8xf32>
    %53 = vector.shape_cast %52 : vector<8xf32> to vector<8x1xf32>
    %54 = tpu.reciprocal %53 {approx = true} : vector<8x1xf32> -> vector<8x1xf32>
    %55 = vector.broadcast %54 : vector<8x1xf32> to vector<8x8xf32>
    %56 = arith.mulf %51, %55 : vector<8x8xf32>
    %c0_30 = arith.constant 0 : index
    %c1 = arith.constant 1 : index
    %c0_31 = arith.constant 0 : index
    %c0_32 = arith.constant 0 : index
    %57 = vector.load %arg13[%c0_30, %c1, %c0_31, %c0_32] : memref<1x4x8x8xf32, #tpu.memory_space<vmem>>, vector<1x1x8x8xf32>
    %58 = vector.shape_cast %57 : vector<1x1x8x8xf32> to vector<8x8xf32>
    %59 = vector.shape_cast %56 : vector<8x8xf32> to vector<1x1x8x8xf32>
    tpu.vector_store %arg13[%c0_30, %c1, %c0_31, %c0_32], %59 {strides = array<i32>} : memref<1x4x8x8xf32, #tpu.memory_space<vmem>>, vector<1x1x8x8xf32>,
    %60 = arith.truncf %56 : vector<8x8xf32> to vector<8x8xbf16>
    %cst_33 = arith.constant dense<0.000000e+00> : vector<8x8xf32>
    %61 = tpu.matmul %60, %45, %cst_33 {dimension_numbers = #tpu.dot_dimension_numbers<[1], [0], [0], [1], [0, 0, 1, 1], [], []>} : vector<8x8xbf16>, vector<8x8xbf16>, vector<8x8xf32> -> vector<8x8xf32>
    %c0_34 = arith.constant 0 : index
    %c8 = arith.constant 8 : index
    %62 = vector.load %arg14[%c0_34, %c8] : memref<8x32xf32, #tpu.memory_space<vmem>>, vector<8x8xf32>
    tpu.vector_store %arg14[%c0_34, %c8], %61 {strides = array<i32>} : memref<8x32xf32, #tpu.memory_space<vmem>>, vector<8x8xf32>,
    %63 = vector.extract_strided_slice %20 {offsets = [0, 16], sizes = [8, 8], strides = [1, 1]} : vector<8x32xbf16> to vector<8x8xbf16>
    %64 = vector.extract_strided_slice %21 {offsets = [0, 16], sizes = [8, 8], strides = [1, 1]} : vector<8x32xbf16> to vector<8x8xbf16>
    %65 = vector.extract_strided_slice %22 {offsets = [0, 16], sizes = [8, 8], strides = [1, 1]} : vector<8x32xbf16> to vector<8x8xbf16>
    "tpu.trace_start"() <{level = 10 : i32, message = "qd,kd->qk"}> : () -> ()
    %cst_35 = arith.constant dense<0.000000e+00> : vector<8x8xf32>
    %66 = tpu.matmul %63, %64, %cst_35 {dimension_numbers = #tpu.dot_dimension_numbers<[1], [1], [0], [0], [0, 0, 1, 0], [], []>} : vector<8x8xbf16>, vector<8x8xbf16>, vector<8x8xf32> -> vector<8x8xf32>
    "tpu.trace_stop"() : () -> ()
    %cst_36 = arith.constant dense<0xFF800000> : vector<8xf32>
    %67 = vector.multi_reduction <maximumf>, %66, %cst_36 [1] : vector<8x8xf32> to vector<8xf32>
    %68 = vector.shape_cast %67 : vector<8xf32> to vector<8x1xf32>
    %69 = vector.broadcast %68 : vector<8x1xf32> to vector<8x8xf32>
    %70 = arith.subf %66, %69 : vector<8x8xf32>
    %71 = math.exp %70 : vector<8x8xf32>
    %cst_37 = arith.constant dense<0.000000e+00> : vector<8xf32>
    %72 = vector.multi_reduction <add>, %71, %cst_37 [1] : vector<8x8xf32> to vector<8xf32>
    %73 = vector.shape_cast %72 : vector<8xf32> to vector<8x1xf32>
    %74 = tpu.reciprocal %73 {approx = true} : vector<8x1xf32> -> vector<8x1xf32>
    %75 = vector.broadcast %74 : vector<8x1xf32> to vector<8x8xf32>
    %76 = arith.mulf %71, %75 : vector<8x8xf32>
    %c0_38 = arith.constant 0 : index
    %c2 = arith.constant 2 : index
    %c0_39 = arith.constant 0 : index
    %c0_40 = arith.constant 0 : index
    %77 = vector.load %arg13[%c0_38, %c2, %c0_39, %c0_40] : memref<1x4x8x8xf32, #tpu.memory_space<vmem>>, vector<1x1x8x8xf32>
    %78 = vector.shape_cast %77 : vector<1x1x8x8xf32> to vector<8x8xf32>
    %79 = vector.shape_cast %76 : vector<8x8xf32> to vector<1x1x8x8xf32>
    tpu.vector_store %arg13[%c0_38, %c2, %c0_39, %c0_40], %79 {strides = array<i32>} : memref<1x4x8x8xf32, #tpu.memory_space<vmem>>, vector<1x1x8x8xf32>,
    %80 = arith.truncf %76 : vector<8x8xf32> to vector<8x8xbf16>
    %cst_41 = arith.constant dense<0.000000e+00> : vector<8x8xf32>
    %81 = tpu.matmul %80, %65, %cst_41 {dimension_numbers = #tpu.dot_dimension_numbers<[1], [0], [0], [1], [0, 0, 1, 1], [], []>} : vector<8x8xbf16>, vector<8x8xbf16>, vector<8x8xf32> -> vector<8x8xf32>
    %c0_42 = arith.constant 0 : index
    %c16 = arith.constant 16 : index
    %82 = vector.load %arg14[%c0_42, %c16] : memref<8x32xf32, #tpu.memory_space<vmem>>, vector<8x8xf32>
    tpu.vector_store %arg14[%c0_42, %c16], %81 {strides = array<i32>} : memref<8x32xf32, #tpu.memory_space<vmem>>, vector<8x8xf32>,
    %83 = vector.extract_strided_slice %20 {offsets = [0, 24], sizes = [8, 8], strides = [1, 1]} : vector<8x32xbf16> to vector<8x8xbf16>
    %84 = vector.extract_strided_slice %21 {offsets = [0, 24], sizes = [8, 8], strides = [1, 1]} : vector<8x32xbf16> to vector<8x8xbf16>
    %85 = vector.extract_strided_slice %22 {offsets = [0, 24], sizes = [8, 8], strides = [1, 1]} : vector<8x32xbf16> to vector<8x8xbf16>
    "tpu.trace_start"() <{level = 10 : i32, message = "qd,kd->qk"}> : () -> ()
    %cst_43 = arith.constant dense<0.000000e+00> : vector<8x8xf32>
    %86 = tpu.matmul %83, %84, %cst_43 {dimension_numbers = #tpu.dot_dimension_numbers<[1], [1], [0], [0], [0, 0, 1, 0], [], []>} : vector<8x8xbf16>, vector<8x8xbf16>, vector<8x8xf32> -> vector<8x8xf32>
    "tpu.trace_stop"() : () -> ()
    %cst_44 = arith.constant dense<0xFF800000> : vector<8xf32>
    %87 = vector.multi_reduction <maximumf>, %86, %cst_44 [1] : vector<8x8xf32> to vector<8xf32>
    %88 = vector.shape_cast %87 : vector<8xf32> to vector<8x1xf32>
    %89 = vector.broadcast %88 : vector<8x1xf32> to vector<8x8xf32>
    %90 = arith.subf %86, %89 : vector<8x8xf32>
    %91 = math.exp %90 : vector<8x8xf32>
    %cst_45 = arith.constant dense<0.000000e+00> : vector<8xf32>
    %92 = vector.multi_reduction <add>, %91, %cst_45 [1] : vector<8x8xf32> to vector<8xf32>
    %93 = vector.shape_cast %92 : vector<8xf32> to vector<8x1xf32>
    %94 = tpu.reciprocal %93 {approx = true} : vector<8x1xf32> -> vector<8x1xf32>
    %95 = vector.broadcast %94 : vector<8x1xf32> to vector<8x8xf32>
    %96 = arith.mulf %91, %95 : vector<8x8xf32>
    %c0_46 = arith.constant 0 : index
    %c3 = arith.constant 3 : index
    %c0_47 = arith.constant 0 : index
    %c0_48 = arith.constant 0 : index
    %97 = vector.load %arg13[%c0_46, %c3, %c0_47, %c0_48] : memref<1x4x8x8xf32, #tpu.memory_space<vmem>>, vector<1x1x8x8xf32>
    %98 = vector.shape_cast %97 : vector<1x1x8x8xf32> to vector<8x8xf32>
    %99 = vector.shape_cast %96 : vector<8x8xf32> to vector<1x1x8x8xf32>
    tpu.vector_store %arg13[%c0_46, %c3, %c0_47, %c0_48], %99 {strides = array<i32>} : memref<1x4x8x8xf32, #tpu.memory_space<vmem>>, vector<1x1x8x8xf32>,
    %100 = arith.truncf %96 : vector<8x8xf32> to vector<8x8xbf16>
    %cst_49 = arith.constant dense<0.000000e+00> : vector<8x8xf32>
    %101 = tpu.matmul %100, %85, %cst_49 {dimension_numbers = #tpu.dot_dimension_numbers<[1], [0], [0], [1], [0, 0, 1, 1], [], []>} : vector<8x8xbf16>, vector<8x8xbf16>, vector<8x8xf32> -> vector<8x8xf32>
    %c0_50 = arith.constant 0 : index
    %c24 = arith.constant 24 : index
    %102 = vector.load %arg14[%c0_50, %c24] : memref<8x32xf32, #tpu.memory_space<vmem>>, vector<8x8xf32>
    tpu.vector_store %arg14[%c0_50, %c24], %101 {strides = array<i32>} : memref<8x32xf32, #tpu.memory_space<vmem>>, vector<8x8xf32>,
    %c0_51 = arith.constant 0 : index
    %c0_52 = arith.constant 0 : index
    %103 = vector.load %arg14[%c0_51, %c0_52] : memref<8x32xf32, #tpu.memory_space<vmem>>, vector<8x32xf32>
    %104 = arith.truncf %103 : vector<8x32xf32> to vector<8x32xbf16>
    %c0_53 = arith.constant 0 : index
    %c0_54 = arith.constant 0 : index
    %105 = vector.load %arg8[%c0_53, %c0_54] : memref<32x32xbf16, #tpu.memory_space<vmem>>, vector<32x32xbf16>
    %cst_55 = arith.constant dense<0.000000e+00> : vector<8x32xf32>
    %106 = tpu.matmul %104, %105, %cst_55 {dimension_numbers = #tpu.dot_dimension_numbers<[1], [0], [0], [1], [0, 0, 1, 1], [], []>} : vector<8x32xbf16>, vector<32x32xbf16>, vector<8x32xf32> -> vector<8x32xf32>
    %c0_56 = arith.constant 0 : index
    %c0_57 = arith.constant 0 : index
    %107 = vector.load %arg9[%c0_56, %c0_57] : memref<1x32xf32, #tpu.memory_space<vmem>>, vector<1x32xf32>
    %108 = vector.broadcast %107 : vector<1x32xf32> to vector<8x32xf32>
    %109 = arith.addf %106, %108 : vector<8x32xf32>
    %110 = arith.addf %109, %1 : vector<8x32xf32>
    %cst_58 = arith.constant dense<0.000000e+00> : vector<8xf32>
    %111 = vector.multi_reduction <add>, %110, %cst_58 [1] : vector<8x32xf32> to vector<8xf32>
    %112 = vector.shape_cast %111 : vector<8xf32> to vector<8x1xf32>
    %cst_59 = arith.constant 3.200000e+01 : f32
    %113 = vector.broadcast %cst_59 : f32 to vector<8x1xf32>
    %114 = arith.divf %112, %113 : vector<8x1xf32>
    %115 = vector.broadcast %114 : vector<8x1xf32> to vector<8x32xf32>
    %116 = arith.subf %110, %115 : vector<8x32xf32>
    %117 = arith.mulf %116, %116 : vector<8x32xf32>
    %cst_60 = arith.constant dense<0.000000e+00> : vector<8xf32>
    %118 = vector.multi_reduction <add>, %117, %cst_60 [1] : vector<8x32xf32> to vector<8xf32>
    %119 = vector.shape_cast %118 : vector<8xf32> to vector<8x1xf32>
    %cst_61 = arith.constant 3.200000e+01 : f32
    %120 = vector.broadcast %cst_61 : f32 to vector<8x1xf32>
    %121 = arith.divf %119, %120 : vector<8x1xf32>
    %cst_62 = arith.constant 9.99999974E-6 : f32
    %122 = vector.broadcast %cst_62 : f32 to vector<8x1xf32>
    %123 = arith.addf %121, %122 : vector<8x1xf32>
    %124 = math.rsqrt %123 : vector<8x1xf32>
    %125 = vector.broadcast %124 : vector<8x1xf32> to vector<8x32xf32>
    %126 = arith.mulf %116, %125 : vector<8x32xf32>
    %c0_63 = arith.constant 0 : index
    %c0_64 = arith.constant 0 : index
    %127 = vector.load %arg10[%c0_63, %c0_64] : memref<1x32xf32, #tpu.memory_space<vmem>>, vector<1x32xf32>
    %128 = vector.broadcast %127 : vector<1x32xf32> to vector<8x32xf32>
    %129 = arith.mulf %126, %128 : vector<8x32xf32>
    %c0_65 = arith.constant 0 : index
    %c0_66 = arith.constant 0 : index
    %130 = vector.load %arg11[%c0_65, %c0_66] : memref<1x32xf32, #tpu.memory_space<vmem>>, vector<1x32xf32>
    %131 = vector.broadcast %130 : vector<1x32xf32> to vector<8x32xf32>
    %132 = arith.addf %129, %131 : vector<8x32xf32>
    %c0_67 = arith.constant 0 : index
    %c0_68 = arith.constant 0 : index
    %c0_69 = arith.constant 0 : index
    %133 = vector.load %arg12[%c0_67, %c0_68, %c0_69] : memref<1x8x32xf32, #tpu.memory_space<vmem>>, vector<1x8x32xf32>
    %134 = vector.shape_cast %133 : vector<1x8x32xf32> to vector<8x32xf32>
    %135 = vector.shape_cast %132 : vector<8x32xf32> to vector<1x8x32xf32>
    tpu.vector_store %arg12[%c0_67, %c0_68, %c0_69], %135 {strides = array<i32>} : memref<1x8x32xf32, #tpu.memory_space<vmem>>, vector<1x8x32xf32>,
    return
  }
  func.func @transform_0(%arg0: i32) -> (i32, i32, i32) {
    %c0_i32 = arith.constant 0 : i32
    %c0_i32_0 = arith.constant 0 : i32
    %c0_i32_1 = arith.constant 0 : i32
    return %arg0, %c0_i32, %c0_i32_0 : i32, i32, i32
  }
  func.func @transform_1(%arg0: i32) -> (i32, i32) {
    %c0_i32 = arith.constant 0 : i32
    %c0_i32_0 = arith.constant 0 : i32
    %c0_i32_1 = arith.constant 0 : i32
    return %c0_i32, %c0_i32_0 : i32, i32
  }
  func.func @transform_2(%arg0: i32) -> (i32, i32) {
    %c0_i32 = arith.constant 0 : i32
    %c0_i32_0 = arith.constant 0 : i32
    %c0_i32_1 = arith.constant 0 : i32
    return %c0_i32, %c0_i32_0 : i32, i32
  }
  func.func @transform_3(%arg0: i32) -> (i32, i32) {
    %c0_i32 = arith.constant 0 : i32
    %c0_i32_0 = arith.constant 0 : i32
    %c0_i32_1 = arith.constant 0 : i32
    return %c0_i32, %c0_i32_0 : i32, i32
  }
  func.func @transform_4(%arg0: i32) -> (i32, i32) {
    %c0_i32 = arith.constant 0 : i32
    %c0_i32_0 = arith.constant 0 : i32
    %c0_i32_1 = arith.constant 0 : i32
    return %c0_i32, %c0_i32_0 : i32, i32
  }
  func.func @transform_5(%arg0: i32) -> (i32, i32) {
    %c0_i32 = arith.constant 0 : i32
    %c0_i32_0 = arith.constant 0 : i32
    %c0_i32_1 = arith.constant 0 : i32
    return %c0_i32, %c0_i32_0 : i32, i32
  }
  func.func @transform_6(%arg0: i32) -> (i32, i32) {
    %c0_i32 = arith.constant 0 : i32
    %c0_i32_0 = arith.constant 0 : i32
    %c0_i32_1 = arith.constant 0 : i32
    return %c0_i32, %c0_i32_0 : i32, i32
  }
  func.func @transform_7(%arg0: i32) -> (i32, i32) {
    %c0_i32 = arith.constant 0 : i32
    %c0_i32_0 = arith.constant 0 : i32
    %c0_i32_1 = arith.constant 0 : i32
    return %c0_i32, %c0_i32_0 : i32, i32
  }
  func.func @transform_8(%arg0: i32) -> (i32, i32) {
    %c0_i32 = arith.constant 0 : i32
    %c0_i32_0 = arith.constant 0 : i32
    %c0_i32_1 = arith.constant 0 : i32
    return %c0_i32, %c0_i32_0 : i32, i32
  }
  func.func @transform_9(%arg0: i32) -> (i32, i32) {
    %c0_i32 = arith.constant 0 : i32
    %c0_i32_0 = arith.constant 0 : i32
    %c0_i32_1 = arith.constant 0 : i32
    return %c0_i32, %c0_i32_0 : i32, i32
  }
  func.func @transform_10(%arg0: i32) -> (i32, i32) {
    %c0_i32 = arith.constant 0 : i32
    %c0_i32_0 = arith.constant 0 : i32
    %c0_i32_1 = arith.constant 0 : i32
    return %c0_i32, %c0_i32_0 : i32, i32
  }
  func.func @transform_11(%arg0: i32) -> (i32, i32, i32) {
    %c0_i32 = arith.constant 0 : i32
    %c0_i32_0 = arith.constant 0 : i32
    %c0_i32_1 = arith.constant 0 : i32
    return %arg0, %c0_i32, %c0_i32_0 : i32, i32, i32
  }
  func.func @transform_12(%arg0: i32) -> (i32, i32, i32, i32) {
    %c0_i32 = arith.constant 0 : i32
    %c0_i32_0 = arith.constant 0 : i32
    %c0_i32_1 = arith.constant 0 : i32
    %c0_i32_2 = arith.constant 0 : i32
    return %arg0, %c0_i32, %c0_i32_0, %c0_i32_1 : i32, i32, i32, i32
  }
}

module attributes {stable_mosaic.version = 11 : i64} {
  func.func @kernel(%arg0: i32, %arg1: memref<1x8x32xf32, #tpu.memory_space<vmem>>, %arg2: memref<32x32xbf16, #tpu.memory_space<vmem>>, %arg3: memref<1x32xf32, #tpu.memory_space<vmem>>, %arg4: memref<32x32xbf16, #tpu.memory_space<vmem>>, %arg5: memref<1x32xf32, #tpu.memory_space<vmem>>, %arg6: memref<32x32xbf16, #tpu.memory_space<vmem>>, %arg7: memref<1x32xf32, #tpu.memory_space<vmem>>, %arg8: memref<32x32xbf16, #tpu.memory_space<vmem>>, %arg9: memref<1x32xf32, #tpu.memory_space<vmem>>, %arg10: memref<1x32xf32, #tpu.memory_space<vmem>>, %arg11: memref<1x32xf32, #tpu.memory_space<vmem>>, %arg12: memref<1x8x32xf32, #tpu.memory_space<vmem>>, %arg13: memref<1x4x8x8xf32, #tpu.memory_space<vmem>>, %arg14: memref<8x32xf32, #tpu.memory_space<vmem>>) attributes {dimension_semantics = [#tpu.dimension_semantics<parallel>], iteration_bounds = array<i64: 2>, scalar_prefetch = 0 : i64, scratch_operands = 1 : i64, tpu.core_type = #tpu.core_type<tc>, window_params = [{transform_indices = @transform_0, window_bounds = array<i64: 1, 8, 32>}, {pipeline_mode = #tpu.pipeline_mode<synchronous>, transform_indices = @transform_1, window_bounds = array<i64: 32, 32>}, {pipeline_mode = #tpu.pipeline_mode<synchronous>, transform_indices = @transform_2, window_bounds = array<i64: 1, 32>}, {pipeline_mode = #tpu.pipeline_mode<synchronous>, transform_indices = @transform_3, window_bounds = array<i64: 32, 32>}, {pipeline_mode = #tpu.pipeline_mode<synchronous>, transform_indices = @transform_4, window_bounds = array<i64: 1, 32>}, {pipeline_mode = #tpu.pipeline_mode<synchronous>, transform_indices = @transform_5, window_bounds = array<i64: 32, 32>}, {pipeline_mode = #tpu.pipeline_mode<synchronous>, transform_indices = @transform_6, window_bounds = array<i64: 1, 32>}, {pipeline_mode = #tpu.pipeline_mode<synchronous>, transform_indices = @transform_7, window_bounds = array<i64: 32, 32>}, {pipeline_mode = #tpu.pipeline_mode<synchronous>, transform_indices = @transform_8, window_bounds = array<i64: 1, 32>}, {pipeline_mode = #tpu.pipeline_mode<synchronous>, transform_indices = @transform_9, window_bounds = array<i64: 1, 32>}, {pipeline_mode = #tpu.pipeline_mode<synchronous>, transform_indices = @transform_10, window_bounds = array<i64: 1, 32>}, {transform_indices = @transform_11, window_bounds = array<i64: 1, 8, 32>}, {transform_indices = @transform_12, window_bounds = array<i64: 1, 4, 8, 8>}]} {
    %c0 = arith.constant 0 : index
    %c0_0 = arith.constant 0 : index
    %c0_1 = arith.constant 0 : index
    %0 = vector.load %arg1[%c0, %c0_0, %c0_1] : memref<1x8x32xf32, #tpu.memory_space<vmem>>, vector<1x8x32xf32>
    %1 = vector.shape_cast %0 : vector<1x8x32xf32> to vector<8x32xf32>
    %2 = arith.truncf %1 : vector<8x32xf32> to vector<8x32xbf16>
    %c0_2 = arith.constant 0 : index
    %c0_3 = arith.constant 0 : index
    %3 = vector.load %arg2[%c0_2, %c0_3] : memref<32x32xbf16, #tpu.memory_space<vmem>>, vector<32x32xbf16>
    %cst = arith.constant dense<0.000000e+00> : vector<8x32xf32>
    %4 = tpu.matmul %2, %3, %cst {dimension_numbers = #tpu.dot_dimension_numbers<[1], [0], [0], [1], [0, 0, 1, 1], [], []>} : vector<8x32xbf16>, vector<32x32xbf16>, vector<8x32xf32> -> vector<8x32xf32>
    %c0_4 = arith.constant 0 : index
    %c0_5 = arith.constant 0 : index
    %5 = vector.load %arg3[%c0_4, %c0_5] : memref<1x32xf32, #tpu.memory_space<vmem>>, vector<1x32xf32>
    %6 = vector.broadcast %5 : vector<1x32xf32> to vector<8x32xf32>
    %7 = arith.addf %4, %6 : vector<8x32xf32>
    %c0_6 = arith.constant 0 : index
    %c0_7 = arith.constant 0 : index
    %8 = vector.load %arg4[%c0_6, %c0_7] : memref<32x32xbf16, #tpu.memory_space<vmem>>, vector<32x32xbf16>
    %cst_8 = arith.constant dense<0.000000e+00> : vector<8x32xf32>
    %9 = tpu.matmul %2, %8, %cst_8 {dimension_numbers = #tpu.dot_dimension_numbers<[1], [0], [0], [1], [0, 0, 1, 1], [], []>} : vector<8x32xbf16>, vector<32x32xbf16>, vector<8x32xf32> -> vector<8x32xf32>
    %c0_9 = arith.constant 0 : index
    %c0_10 = arith.constant 0 : index
    %10 = vector.load %arg5[%c0_9, %c0_10] : memref<1x32xf32, #tpu.memory_space<vmem>>, vector<1x32xf32>
    %11 = vector.broadcast %10 : vector<1x32xf32> to vector<8x32xf32>
    %12 = arith.addf %9, %11 : vector<8x32xf32>
    %c0_11 = arith.constant 0 : index
    %c0_12 = arith.constant 0 : index
    %13 = vector.load %arg6[%c0_11, %c0_12] : memref<32x32xbf16, #tpu.memory_space<vmem>>, vector<32x32xbf16>
    %cst_13 = arith.constant dense<0.000000e+00> : vector<8x32xf32>
    %14 = tpu.matmul %2, %13, %cst_13 {dimension_numbers = #tpu.dot_dimension_numbers<[1], [0], [0], [1], [0, 0, 1, 1], [], []>} : vector<8x32xbf16>, vector<32x32xbf16>, vector<8x32xf32> -> vector<8x32xf32>
    %c0_14 = arith.constant 0 : index
    %c0_15 = arith.constant 0 : index
    %15 = vector.load %arg7[%c0_14, %c0_15] : memref<1x32xf32, #tpu.memory_space<vmem>>, vector<1x32xf32>
    %16 = vector.broadcast %15 : vector<1x32xf32> to vector<8x32xf32>
    %17 = arith.addf %14, %16 : vector<8x32xf32>
    %cst_16 = arith.constant 0.353553385 : f32
    %18 = vector.broadcast %cst_16 : f32 to vector<8x32xf32>
    %19 = arith.mulf %7, %18 : vector<8x32xf32>
    %20 = arith.truncf %19 : vector<8x32xf32> to vector<8x32xbf16>
    %21 = arith.truncf %12 : vector<8x32xf32> to vector<8x32xbf16>
    %22 = arith.truncf %17 : vector<8x32xf32> to vector<8x32xbf16>
    %23 = vector.extract_strided_slice %20 {offsets = [0, 0], sizes = [8, 8], strides = [1, 1]} : vector<8x32xbf16> to vector<8x8xbf16>
    %24 = vector.extract_strided_slice %21 {offsets = [0, 0], sizes = [8, 8], strides = [1, 1]} : vector<8x32xbf16> to vector<8x8xbf16>
    %25 = vector.extract_strided_slice %22 {offsets = [0, 0], sizes = [8, 8], strides = [1, 1]} : vector<8x32xbf16> to vector<8x8xbf16>
    "tpu.trace_start"() <{level = 10 : i32, message = "qd,kd->qk"}> : () -> ()
    %cst_17 = arith.constant dense<0.000000e+00> : vector<8x8xf32>
    %26 = tpu.matmul %23, %24, %cst_17 {dimension_numbers = #tpu.dot_dimension_numbers<[1], [1], [0], [0], [0, 0, 1, 0], [], []>} : vector<8x8xbf16>, vector<8x8xbf16>, vector<8x8xf32> -> vector<8x8xf32>
    "tpu.trace_stop"() : () -> ()
    %cst_18 = arith.constant dense<0xFF800000> : vector<8xf32>
    %27 = vector.multi_reduction <maximumf>, %26, %cst_18 [1] : vector<8x8xf32> to vector<8xf32>
    %28 = vector.shape_cast %27 : vector<8xf32> to vector<8x1xf32>
    %29 = vector.broadcast %28 : vector<8x1xf32> to vector<8x8xf32>
    %30 = arith.subf %26, %29 : vector<8x8xf32>
    %31 = math.exp %30 : vector<8x8xf32>
    %cst_19 = arith.constant dense<0.000000e+00> : vector<8xf32>
    %32 = vector.multi_reduction <add>, %31, %cst_19 [1] : vector<8x8xf32> to vector<8xf32>
    %33 = vector.shape_cast %32 : vector<8xf32> to vector<8x1xf32>
    %34 = tpu.reciprocal %33 {approx = true} : vector<8x1xf32> -> vector<8x1xf32>
    %35 = vector.broadcast %34 : vector<8x1xf32> to vector<8x8xf32>
    %36 = arith.mulf %31, %35 : vector<8x8xf32>
    %c0_20 = arith.constant 0 : index
    %c0_21 = arith.constant 0 : index
    %c0_22 = arith.constant 0 : index
    %c0_23 = arith.constant 0 : index
    %37 = vector.load %arg13[%c0_20, %c0_21, %c0_22, %c0_23] : memref<1x4x8x8xf32, #tpu.memory_space<vmem>>, vector<1x1x8x8xf32>
    %38 = vector.shape_cast %37 : vector<1x1x8x8xf32> to vector<8x8xf32>
    %39 = vector.shape_cast %36 : vector<8x8xf32> to vector<1x1x8x8xf32>
    tpu.vector_store %arg13[%c0_20, %c0_21, %c0_22, %c0_23], %39 {strides = array<i32>} : memref<1x4x8x8xf32, #tpu.memory_space<vmem>>, vector<1x1x8x8xf32>,
    %40 = arith.truncf %36 : vector<8x8xf32> to vector<8x8xbf16>
    %cst_24 = arith.constant dense<0.000000e+00> : vector<8x8xf32>
    %41 = tpu.matmul %40, %25, %cst_24 {dimension_numbers = #tpu.dot_dimension_numbers<[1], [0], [0], [1], [0, 0, 1, 1], [], []>} : vector<8x8xbf16>, vector<8x8xbf16>, vector<8x8xf32> -> vector<8x8xf32>
    %c0_25 = arith.constant 0 : index
    %c0_26 = arith.constant 0 : index
    %42 = vector.load %arg14[%c0_25, %c0_26] : memref<8x32xf32, #tpu.memory_space<vmem>>, vector<8x8xf32>
    tpu.vector_store %arg14[%c0_25, %c0_26], %41 {strides = array<i32>} : memref<8x32xf32, #tpu.memory_space<vmem>>, vector<8x8xf32>,
    %43 = vector.extract_strided_slice %20 {offsets = [0, 8], sizes = [8, 8], strides = [1, 1]} : vector<8x32xbf16> to vector<8x8xbf16>
    %44 = vector.extract_strided_slice %21 {offsets = [0, 8], sizes = [8, 8], strides = [1, 1]} : vector<8x32xbf16> to vector<8x8xbf16>
    %45 = vector.extract_strided_slice %22 {offsets = [0, 8], sizes = [8, 8], strides = [1, 1]} : vector<8x32xbf16> to vector<8x8xbf16>
    "tpu.trace_start"() <{level = 10 : i32, message = "qd,kd->qk"}> : () -> ()
    %cst_27 = arith.constant dense<0.000000e+00> : vector<8x8xf32>
    %46 = tpu.matmul %43, %44, %cst_27 {dimension_numbers = #tpu.dot_dimension_numbers<[1], [1], [0], [0], [0, 0, 1, 0], [], []>} : vector<8x8xbf16>, vector<8x8xbf16>, vector<8x8xf32> -> vector<8x8xf32>
    "tpu.trace_stop"() : () -> ()
    %cst_28 = arith.constant dense<0xFF800000> : vector<8xf32>
    %47 = vector.multi_reduction <maximumf>, %46, %cst_28 [1] : vector<8x8xf32> to vector<8xf32>
    %48 = vector.shape_cast %47 : vector<8xf32> to vector<8x1xf32>
    %49 = vector.broadcast %48 : vector<8x1xf32> to vector<8x8xf32>
    %50 = arith.subf %46, %49 : vector<8x8xf32>
    %51 = math.exp %50 : vector<8x8xf32>
    %cst_29 = arith.constant dense<0.000000e+00> : vector<8xf32>
    %52 = vector.multi_reduction <add>, %51, %cst_29 [1] : vector<8x8xf32> to vector<8xf32>
    %53 = vector.shape_cast %52 : vector<8xf32> to vector<8x1xf32>
    %54 = tpu.reciprocal %53 {approx = true} : vector<8x1xf32> -> vector<8x1xf32>
    %55 = vector.broadcast %54 : vector<8x1xf32> to vector<8x8xf32>
    %56 = arith.mulf %51, %55 : vector<8x8xf32>
    %c0_30 = arith.constant 0 : index
    %c1 = arith.constant 1 : index
    %c0_31 = arith.constant 0 : index
    %c0_32 = arith.constant 0 : index
    %57 = vector.load %arg13[%c0_30, %c1, %c0_31, %c0_32] : memref<1x4x8x8xf32, #tpu.memory_space<vmem>>, vector<1x1x8x8xf32>
    %58 = vector.shape_cast %57 : vector<1x1x8x8xf32> to vector<8x8xf32>
    %59 = vector.shape_cast %56 : vector<8x8xf32> to vector<1x1x8x8xf32>
    tpu.vector_store %arg13[%c0_30, %c1, %c0_31, %c0_32], %59 {strides = array<i32>} : memref<1x4x8x8xf32, #tpu.memory_space<vmem>>, vector<1x1x8x8xf32>,
    %60 = arith.truncf %56 : vector<8x8xf32> to vector<8x8xbf16>
    %cst_33 = arith.constant dense<0.000000e+00> : vector<8x8xf32>
    %61 = tpu.matmul %60, %45, %cst_33 {dimension_numbers = #tpu.dot_dimension_numbers<[1], [0], [0], [1], [0, 0, 1, 1], [], []>} : vector<8x8xbf16>, vector<8x8xbf16>, vector<8x8xf32> -> vector<8x8xf32>
    %c0_34 = arith.constant 0 : index
    %c8 = arith.constant 8 : index
    %62 = vector.load %arg14[%c0_34, %c8] : memref<8x32xf32, #tpu.memory_space<vmem>>, vector<8x8xf32>
    tpu.vector_store %arg14[%c0_34, %c8], %61 {strides = array<i32>} : memref<8x32xf32, #tpu.memory_space<vmem>>, vector<8x8xf32>,
    %63 = vector.extract_strided_slice %20 {offsets = [0, 16], sizes = [8, 8], strides = [1, 1]} : vector<8x32xbf16> to vector<8x8xbf16>
    %64 = vector.extract_strided_slice %21 {offsets = [0, 16], sizes = [8, 8], strides = [1, 1]} : vector<8x32xbf16> to vector<8x8xbf16>
    %65 = vector.extract_strided_slice %22 {offsets = [0, 16], sizes = [8, 8], strides = [1, 1]} : vector<8x32xbf16> to vector<8x8xbf16>
    "tpu.trace_start"() <{level = 10 : i32, message = "qd,kd->qk"}> : () -> ()
    %cst_35 = arith.constant dense<0.000000e+00> : vector<8x8xf32>
    %66 = tpu.matmul %63, %64, %cst_35 {dimension_numbers = #tpu.dot_dimension_numbers<[1], [1], [0], [0], [0, 0, 1, 0], [], []>} : vector<8x8xbf16>, vector<8x8xbf16>, vector<8x8xf32> -> vector<8x8xf32>
    "tpu.trace_stop"() : () -> ()
    %cst_36 = arith.constant dense<0xFF800000> : vector<8xf32>
    %67 = vector.multi_reduction <maximumf>, %66, %cst_36 [1] : vector<8x8xf32> to vector<8xf32>
    %68 = vector.shape_cast %67 : vector<8xf32> to vector<8x1xf32>
    %69 = vector.broadcast %68 : vector<8x1xf32> to vector<8x8xf32>
    %70 = arith.subf %66, %69 : vector<8x8xf32>
    %71 = math.exp %70 : vector<8x8xf32>
    %cst_37 = arith.constant dense<0.000000e+00> : vector<8xf32>
    %72 = vector.multi_reduction <add>, %71, %cst_37 [1] : vector<8x8xf32> to vector<8xf32>
    %73 = vector.shape_cast %72 : vector<8xf32> to vector<8x1xf32>
    %74 = tpu.reciprocal %73 {approx = true} : vector<8x1xf32> -> vector<8x1xf32>
    %75 = vector.broadcast %74 : vector<8x1xf32> to vector<8x8xf32>
    %76 = arith.mulf %71, %75 : vector<8x8xf32>
    %c0_38 = arith.constant 0 : index
    %c2 = arith.constant 2 : index
    %c0_39 = arith.constant 0 : index
    %c0_40 = arith.constant 0 : index
    %77 = vector.load %arg13[%c0_38, %c2, %c0_39, %c0_40] : memref<1x4x8x8xf32, #tpu.memory_space<vmem>>, vector<1x1x8x8xf32>
    %78 = vector.shape_cast %77 : vector<1x1x8x8xf32> to vector<8x8xf32>
    %79 = vector.shape_cast %76 : vector<8x8xf32> to vector<1x1x8x8xf32>
    tpu.vector_store %arg13[%c0_38, %c2, %c0_39, %c0_40], %79 {strides = array<i32>} : memref<1x4x8x8xf32, #tpu.memory_space<vmem>>, vector<1x1x8x8xf32>,
    %80 = arith.truncf %76 : vector<8x8xf32> to vector<8x8xbf16>
    %cst_41 = arith.constant dense<0.000000e+00> : vector<8x8xf32>
    %81 = tpu.matmul %80, %65, %cst_41 {dimension_numbers = #tpu.dot_dimension_numbers<[1], [0], [0], [1], [0, 0, 1, 1], [], []>} : vector<8x8xbf16>, vector<8x8xbf16>, vector<8x8xf32> -> vector<8x8xf32>
    %c0_42 = arith.constant 0 : index
    %c16 = arith.constant 16 : index
    %82 = vector.load %arg14[%c0_42, %c16] : memref<8x32xf32, #tpu.memory_space<vmem>>, vector<8x8xf32>
    tpu.vector_store %arg14[%c0_42, %c16], %81 {strides = array<i32>} : memref<8x32xf32, #tpu.memory_space<vmem>>, vector<8x8xf32>,
    %83 = vector.extract_strided_slice %20 {offsets = [0, 24], sizes = [8, 8], strides = [1, 1]} : vector<8x32xbf16> to vector<8x8xbf16>
    %84 = vector.extract_strided_slice %21 {offsets = [0, 24], sizes = [8, 8], strides = [1, 1]} : vector<8x32xbf16> to vector<8x8xbf16>
    %85 = vector.extract_strided_slice %22 {offsets = [0, 24], sizes = [8, 8], strides = [1, 1]} : vector<8x32xbf16> to vector<8x8xbf16>
    "tpu.trace_start"() <{level = 10 : i32, message = "qd,kd->qk"}> : () -> ()
    %cst_43 = arith.constant dense<0.000000e+00> : vector<8x8xf32>
    %86 = tpu.matmul %83, %84, %cst_43 {dimension_numbers = #tpu.dot_dimension_numbers<[1], [1], [0], [0], [0, 0, 1, 0], [], []>} : vector<8x8xbf16>, vector<8x8xbf16>, vector<8x8xf32> -> vector<8x8xf32>
    "tpu.trace_stop"() : () -> ()
    %cst_44 = arith.constant dense<0xFF800000> : vector<8xf32>
    %87 = vector.multi_reduction <maximumf>, %86, %cst_44 [1] : vector<8x8xf32> to vector<8xf32>
    %88 = vector.shape_cast %87 : vector<8xf32> to vector<8x1xf32>
    %89 = vector.broadcast %88 : vector<8x1xf32> to vector<8x8xf32>
    %90 = arith.subf %86, %89 : vector<8x8xf32>
    %91 = math.exp %90 : vector<8x8xf32>
    %cst_45 = arith.constant dense<0.000000e+00> : vector<8xf32>
    %92 = vector.multi_reduction <add>, %91, %cst_45 [1] : vector<8x8xf32> to vector<8xf32>
    %93 = vector.shape_cast %92 : vector<8xf32> to vector<8x1xf32>
    %94 = tpu.reciprocal %93 {approx = true} : vector<8x1xf32> -> vector<8x1xf32>
    %95 = vector.broadcast %94 : vector<8x1xf32> to vector<8x8xf32>
    %96 = arith.mulf %91, %95 : vector<8x8xf32>
    %c0_46 = arith.constant 0 : index
    %c3 = arith.constant 3 : index
    %c0_47 = arith.constant 0 : index
    %c0_48 = arith.constant 0 : index
    %97 = vector.load %arg13[%c0_46, %c3, %c0_47, %c0_48] : memref<1x4x8x8xf32, #tpu.memory_space<vmem>>, vector<1x1x8x8xf32>
    %98 = vector.shape_cast %97 : vector<1x1x8x8xf32> to vector<8x8xf32>
    %99 = vector.shape_cast %96 : vector<8x8xf32> to vector<1x1x8x8xf32>
    tpu.vector_store %arg13[%c0_46, %c3, %c0_47, %c0_48], %99 {strides = array<i32>} : memref<1x4x8x8xf32, #tpu.memory_space<vmem>>, vector<1x1x8x8xf32>,
    %100 = arith.truncf %96 : vector<8x8xf32> to vector<8x8xbf16>
    %cst_49 = arith.constant dense<0.000000e+00> : vector<8x8xf32>
    %101 = tpu.matmul %100, %85, %cst_49 {dimension_numbers = #tpu.dot_dimension_numbers<[1], [0], [0], [1], [0, 0, 1, 1], [], []>} : vector<8x8xbf16>, vector<8x8xbf16>, vector<8x8xf32> -> vector<8x8xf32>
    %c0_50 = arith.constant 0 : index
    %c24 = arith.constant 24 : index
    %102 = vector.load %arg14[%c0_50, %c24] : memref<8x32xf32, #tpu.memory_space<vmem>>, vector<8x8xf32>
    tpu.vector_store %arg14[%c0_50, %c24], %101 {strides = array<i32>} : memref<8x32xf32, #tpu.memory_space<vmem>>, vector<8x8xf32>,
    %c0_51 = arith.constant 0 : index
    %c0_52 = arith.constant 0 : index
    %103 = vector.load %arg14[%c0_51, %c0_52] : memref<8x32xf32, #tpu.memory_space<vmem>>, vector<8x32xf32>
    %104 = arith.truncf %103 : vector<8x32xf32> to vector<8x32xbf16>
    %c0_53 = arith.constant 0 : index
    %c0_54 = arith.constant 0 : index
    %105 = vector.load %arg8[%c0_53, %c0_54] : memref<32x32xbf16, #tpu.memory_space<vmem>>, vector<32x32xbf16>
    %cst_55 = arith.constant dense<0.000000e+00> : vector<8x32xf32>
    %106 = tpu.matmul %104, %105, %cst_55 {dimension_numbers = #tpu.dot_dimension_numbers<[1], [0], [0], [1], [0, 0, 1, 1], [], []>} : vector<8x32xbf16>, vector<32x32xbf16>, vector<8x32xf32> -> vector<8x32xf32>
    %c0_56 = arith.constant 0 : index
    %c0_57 = arith.constant 0 : index
    %107 = vector.load %arg9[%c0_56, %c0_57] : memref<1x32xf32, #tpu.memory_space<vmem>>, vector<1x32xf32>
    %108 = vector.broadcast %107 : vector<1x32xf32> to vector<8x32xf32>
    %109 = arith.addf %106, %108 : vector<8x32xf32>
    %110 = arith.addf %109, %1 : vector<8x32xf32>
    %cst_58 = arith.constant dense<0.000000e+00> : vector<8xf32>
    %111 = vector.multi_reduction <add>, %110, %cst_58 [1] : vector<8x32xf32> to vector<8xf32>
    %112 = vector.shape_cast %111 : vector<8xf32> to vector<8x1xf32>
    %cst_59 = arith.constant 3.200000e+01 : f32
    %113 = vector.broadcast %cst_59 : f32 to vector<8x1xf32>
    %114 = arith.divf %112, %113 : vector<8x1xf32>
    %115 = vector.broadcast %114 : vector<8x1xf32> to vector<8x32xf32>
    %116 = arith.subf %110, %115 : vector<8x32xf32>
    %117 = arith.mulf %116, %116 : vector<8x32xf32>
    %cst_60 = arith.constant dense<0.000000e+00> : vector<8xf32>
    %118 = vector.multi_reduction <add>, %117, %cst_60 [1] : vector<8x32xf32> to vector<8xf32>
    %119 = vector.shape_cast %118 : vector<8xf32> to vector<8x1xf32>
    %cst_61 = arith.constant 3.200000e+01 : f32
    %120 = vector.broadcast %cst_61 : f32 to vector<8x1xf32>
    %121 = arith.divf %119, %120 : vector<8x1xf32>
    %cst_62 = arith.constant 9.99999974E-6 : f32
    %122 = vector.broadcast %cst_62 : f32 to vector<8x1xf32>
    %123 = arith.addf %121, %122 : vector<8x1xf32>
    %124 = math.rsqrt %123 : vector<8x1xf32>
    %125 = vector.broadcast %124 : vector<8x1xf32> to vector<8x32xf32>
    %126 = arith.mulf %116, %125 : vector<8x32xf32>
    %c0_63 = arith.constant 0 : index
    %c0_64 = arith.constant 0 : index
    %127 = vector.load %arg10[%c0_63, %c0_64] : memref<1x32xf32, #tpu.memory_space<vmem>>, vector<1x32xf32>
    %128 = vector.broadcast %127 : vector<1x32xf32> to vector<8x32xf32>
    %129 = arith.mulf %126, %128 : vector<8x32xf32>
    %c0_65 = arith.constant 0 : index
    %c0_66 = arith.constant 0 : index
    %130 = vector.load %arg11[%c0_65, %c0_66] : memref<1x32xf32, #tpu.memory_space<vmem>>, vector<1x32xf32>
    %131 = vector.broadcast %130 : vector<1x32xf32> to vector<8x32xf32>
    %132 = arith.addf %129, %131 : vector<8x32xf32>
    %c0_67 = arith.constant 0 : index
    %c0_68 = arith.constant 0 : index
    %c0_69 = arith.constant 0 : index
    %133 = vector.load %arg12[%c0_67, %c0_68, %c0_69] : memref<1x8x32xf32, #tpu.memory_space<vmem>>, vector<1x8x32xf32>
    %134 = vector.shape_cast %133 : vector<1x8x32xf32> to vector<8x32xf32>
    %135 = vector.shape_cast %132 : vector<8x32xf32> to vector<1x8x32xf32>
    tpu.vector_store %arg12[%c0_67, %c0_68, %c0_69], %135 {strides = array<i32>} : memref<1x8x32xf32, #tpu.memory_space<vmem>>, vector<1x8x32xf32>,
    return
  }
  func.func @transform_0(%arg0: i32) -> (i32, i32, i32) {
    %c0_i32 = arith.constant 0 : i32
    %c0_i32_0 = arith.constant 0 : i32
    %c0_i32_1 = arith.constant 0 : i32
    return %arg0, %c0_i32, %c0_i32_0 : i32, i32, i32
  }
  func.func @transform_1(%arg0: i32) -> (i32, i32) {
    %c0_i32 = arith.constant 0 : i32
    %c0_i32_0 = arith.constant 0 : i32
    %c0_i32_1 = arith.constant 0 : i32
    return %c0_i32, %c0_i32_0 : i32, i32
  }
  func.func @transform_2(%arg0: i32) -> (i32, i32) {
    %c0_i32 = arith.constant 0 : i32
    %c0_i32_0 = arith.constant 0 : i32
    %c0_i32_1 = arith.constant 0 : i32
    return %c0_i32, %c0_i32_0 : i32, i32
  }
  func.func @transform_3(%arg0: i32) -> (i32, i32) {
    %c0_i32 = arith.constant 0 : i32
    %c0_i32_0 = arith.constant 0 : i32
    %c0_i32_1 = arith.constant 0 : i32
    return %c0_i32, %c0_i32_0 : i32, i32
  }
  func.func @transform_4(%arg0: i32) -> (i32, i32) {
    %c0_i32 = arith.constant 0 : i32
    %c0_i32_0 = arith.constant 0 : i32
    %c0_i32_1 = arith.constant 0 : i32
    return %c0_i32, %c0_i32_0 : i32, i32
  }
  func.func @transform_5(%arg0: i32) -> (i32, i32) {
    %c0_i32 = arith.constant 0 : i32
    %c0_i32_0 = arith.constant 0 : i32
    %c0_i32_1 = arith.constant 0 : i32
    return %c0_i32, %c0_i32_0 : i32, i32
  }
  func.func @transform_6(%arg0: i32) -> (i32, i32) {
    %c0_i32 = arith.constant 0 : i32
    %c0_i32_0 = arith.constant 0 : i32
    %c0_i32_1 = arith.constant 0 : i32
    return %c0_i32, %c0_i32_0 : i32, i32
  }
  func.func @transform_7(%arg0: i32) -> (i32, i32) {
    %c0_i32 = arith.constant 0 : i32
    %c0_i32_0 = arith.constant 0 : i32
    %c0_i32_1 = arith.constant 0 : i32
    return %c0_i32, %c0_i32_0 : i32, i32
  }
  func.func @transform_8(%arg0: i32) -> (i32, i32) {
    %c0_i32 = arith.constant 0 : i32
    %c0_i32_0 = arith.constant 0 : i32
    %c0_i32_1 = arith.constant 0 : i32
    return %c0_i32, %c0_i32_0 : i32, i32
  }
  func.func @transform_9(%arg0: i32) -> (i32, i32) {
    %c0_i32 = arith.constant 0 : i32
    %c0_i32_0 = arith.constant 0 : i32
    %c0_i32_1 = arith.constant 0 : i32
    return %c0_i32, %c0_i32_0 : i32, i32
  }
  func.func @transform_10(%arg0: i32) -> (i32, i32) {
    %c0_i32 = arith.constant 0 : i32
    %c0_i32_0 = arith.constant 0 : i32
    %c0_i32_1 = arith.constant 0 : i32
    return %c0_i32, %c0_i32_0 : i32, i32
  }
  func.func @transform_11(%arg0: i32) -> (i32, i32, i32) {
    %c0_i32 = arith.constant 0 : i32
    %c0_i32_0 = arith.constant 0 : i32
    %c0_i32_1 = arith.constant 0 : i32
    return %arg0, %c0_i32, %c0_i32_0 : i32, i32, i32
  }
  func.func @transform_12(%arg0: i32) -> (i32, i32, i32, i32) {
    %c0_i32 = arith.constant 0 : i32
    %c0_i32_0 = arith.constant 0 : i32
    %c0_i32_1 = arith.constant 0 : i32
    %c0_i32_2 = arith.constant 0 : i32
    return %arg0, %c0_i32, %c0_i32_0, %c0_i32_1 : i32, i32, i32, i32
  }
}

</mosaic_0001>

<bundles_post_ra>
// kernel: tpu_custom_call.1
= control target key start
LH: loop header
LB: loop body
LE: loop exit
PB: predicated region body
PF: predicated region fallthrough
CT: control target
= control target key end

     0   :  { %s2421_s0 = inlined_call_operand.hbm [shape: f32[2,8,32], index: 0, kind: input, shape index: {}]   ;;  %s2422_s1 = inlined_call_operand.hbm [shape: bf16[32,32], index: 1, kind: input, shape index: {}]   ;;  %s2423_s2 = inlined_call_operand.vmem [shape: f32[1,32], index: 2, kind: input, shape index: {}]   ;;  %s2424_s3 = inlined_call_operand.hbm [shape: bf16[32,32], index: 3, kind: input, shape index: {}]   ;;  %s2425_s4 = inlined_call_operand.vmem [shape: f32[1,32], index: 4, kind: input, shape index: {}]   ;;  %s2426_s5 = inlined_call_operand.vmem [shape: bf16[32,32], index: 5, kind: input, shape index: {}]   ;;  %s2427_s6 = inlined_call_operand.vmem [shape: f32[1,32], index: 6, kind: input, shape index: {}]   ;;  %s2428_s7 = inlined_call_operand.hbm [shape: bf16[32,32], index: 7, kind: input, shape index: {}]   ;;  %s2429_s8 = inlined_call_operand.vmem [shape: f32[1,32], index: 8, kind: input, shape index: {}]   ;;  %s2430_s9 = inlined_call_operand.vmem [shape: f32[1,32], index: 9, kind: input, shape index: {}]   ;;  %s2431_s10 = inlined_call_operand.vmem [shape: f32[1,32], index: 10, kind: input, shape index: {}]   ;;  %s2432_s11 = inlined_call_operand.hbm [shape: f32[2,8,32], index: 11, kind: output, shape index: {0}]   ;;  %s2433_s12 = inlined_call_operand.hbm [shape: f32[2,4,8,8], index: 12, kind: output, shape index: {1}]  }
   0x1   :  { %2441 = sst [smem:[#allocation21_spill]] %s2421_s0 }
   0x2   :  { %2442 = sst [smem:[#allocation22_spill]] %s2430_s9 }
   0x3   :  { %2443 = sst [smem:[#allocation23_spill]] %s2431_s10 }
   0x4   :  { %2444 = sst [smem:[#allocation24_spill]] %s2432_s11 }
   0x5   :  { %2445 = sst [smem:[#allocation25_spill]] %s2433_s12 }
   0x6   :  { %18 = vsyncpa [#allocation4], 0 }
   0x7   :  { %20 = vsyncpa [#allocation4 + $0x1], 0 }
   0x8   :  { %21 = vsyncpa [#allocation7], 0 }
   0x9   :  { %22 = vsyncpa [#allocation10], 0 }
   0xa   :  { %23 = vsyncpa [#allocation5], 0 }
   0xb   :  { %25 = vsyncpa [#allocation5 + $0x1], 0 }
   0xc   :  { %26 = vsyncpa [#allocation13], 0 }
   0xd   :  { %28 = vsyncpa [#allocation13 + $0x1], 0  ;;  %s1998_s21 = smov 0   ;;  %s2000_s22 = smov 0  }
   0xe   :  { %s2002_s23 = smov 0   ;;  %s2004_s24 = smov 0  }
   0xf LB: > { %2446 = sst [smem:[#allocation19_spill]] %s1902_s21  ;;  %s2019_s25 = sadd.s32 4294967295, %s1914_s24   ;;  %s1914_s24 = sphi %s2004_s24, %s2475_s24   ;;  %s1910_s23 = sphi %s2002_s23, %s2474_s23   ;;  %s1906_s22 = sphi %s2000_s22, %s2473_s22   ;;  %s1902_s21 = sphi %s1998_s21, %s2472_s21  }
  0x10   : > { %s1415_s26 = sadd.s32 4294967294, %s1914_s24   ;;  %p54_p0 = scmp.ne.s32.totalorder %s1906_s22, %s1902_s21 }
  0x11   : > { %p2436_p1 = scmp.eq.s32.totalorder %s2019_s25, 0  ;;  %p294_p3 = scmp.eq.s32.totalorder %s1415_s26, 1 }
  0x12   : > { %p1416_p5 = scmp.ge.s32.totalorder %s1914_s24, 1  ;;  %p327_p7 = scmp.lt.s32.totalorder %s1914_s24, 3 }
  0x13   : > { %p2028_p4 = por %p2436_p1, %p54_p0  ;;  %p2033_p6 = por %p294_p3, %p54_p0 }
  0x14   : > { %p2038_p8 = pnand %p1416_p5, %p327_p7  ;;  %s1916_s30 = smov [#allocation6]  }
  0x15   : > { %s2447_s27 = scalar_select %p2028_p4, 1, 0 }
  0x16   : > { %s2448_s28 = scalar_select %p2033_p6, 1, 0 }
  0x17   : > { %s2450_s29 = scalar_select %p2038_p8, 1, 0 }
  0x18   : > { %2449 = sst [smem:[#allocation20_spill]] %s2448_s28  ;;  %s339_s13 = sshll.u32 %s1916_s30, 4  ;;  %s2042_s13 = int_to_ptr.vmem [resolvable:$true] %s339_s13 }
  0x19   : > { %p1593_p9 = pneg %p2038_p8  ;;  %s1917_s15 = smov [#allocation8]  }
  0x1a   : > { %s355_s16 = sshll.u32 %s1917_s15, 4  ;;  %s1918_s17 = smov [#allocation9]   ;;  %s2053_s16 = int_to_ptr.vmem [resolvable:$true] %s355_s16 }
  0x1b   : > { %p2049_p11 = pnand %p1593_p9, %p2436_p1  ;;  %s2055_s18 = sshll.u32 %s1918_s17, 4  ;;  %s378_s18 = int_to_ptr.vmem [resolvable:$true] %s2055_s18 }
  0x1c   : > { %s1694_s26 = scalar_lea.hbm %s2422_s1, 256 }
  0x1d   : > { %p1695_p12 = scmp.ne.s32.totalorder %s2422_s1, %s1694_s26  ;;  %p2065_p13 = pneg %p2049_p11 }
  0x1e   : > { %p1701_p5 = scmp.lt.u32.totalorder %s1694_s26, %s2422_s1 }
  0x1f   : > { %p1697_p0 = pnand %p2065_p13, %p1695_p12 }
  0x21   : > { %p1698_p3 = pneg %p1697_p0 }
  0x23   : > { %p1703_p7 = pnand %p1701_p5, %p1698_p3 }
  0x25   : > { %1706 = shalt.err (!%p1703_p7)
}
  0x26   : > { %s1707_s28 = scalar_lea.vmem %s2042_s13, 256  ;;  %p1715_p2 = scmp.lt.s32.totalorder %s2042_s13, %s2042_s13 }
  0x27   : > { %p1708_p9 = scmp.ne.s32.totalorder %s2042_s13, %s1707_s28  ;;  %p1716_p6 = scmp.lt.s32.totalorder %s1707_s28, %s1707_s28 }
  0x29   : > { %p1710_p10 = pnand %p1708_p9, %p2065_p13  ;;  %p1717_p12 = por %p1716_p6, %p1715_p2 }
  0x2b   : > { %p1711_p1 = pneg %p1710_p10 }
  0x2d   : > { %p1718_p0 = pnand %p1717_p12, %p1711_p1 }
  0x2f   : > { %1721 = shalt.err (!%p1718_p0)
}
  0x30   : > { %s1919_s19 = smov 64   ;;  %s1920_s20 = smov 4  }
  0x31   : > { %1596 = dma.hbm_to_vmem [thread:$0]  (!%p2049_p11), %s2422_s1, 256, %s2042_s13, [#allocation7], %s1919_s19, %s1919_s19, %s1920_s20  }
  0x32   : > { %s1722_s28 = scalar_lea.hbm %s2424_s3, 256 }
  0x33   : > { %p1723_p1 = scmp.ne.s32.totalorder %s2424_s3, %s1722_s28  ;;  %p1729_p10 = scmp.lt.u32.totalorder %s1722_s28, %s2424_s3 }
  0x35   : > { %p1725_p2 = pnand %p1723_p1, %p2065_p13 }
  0x37   : > { %p1726_p6 = pneg %p1725_p2 }
  0x39   : > { %p1731_p3 = pnand %p1729_p10, %p1726_p6 }
  0x3b   : > { %1734 = shalt.err (!%p1731_p3)
}
  0x3c   : > { %s1735_s13 = scalar_lea.vmem %s2053_s16, 256  ;;  %p1743_p12 = scmp.lt.s32.totalorder %s2053_s16, %s2053_s16 }
  0x3d   : > { %p1736_p5 = scmp.ne.s32.totalorder %s2053_s16, %s1735_s13  ;;  %p1744_p0 = scmp.lt.s32.totalorder %s1735_s13, %s1735_s13 }
  0x3f   : > { %p1738_p7 = pnand %p1736_p5, %p2065_p13  ;;  %p1745_p1 = por %p1744_p0, %p1743_p12 }
  0x41   : > { %p1739_p9 = pneg %p1738_p7 }
  0x43   : > { %p1746_p2 = pnand %p1745_p1, %p1739_p9 }
  0x45   : > { %1749 = shalt.err (!%p1746_p2)
}
  0x46   : > { %1599 = dma.hbm_to_vmem [thread:$0]  (!%p2049_p11), %s2424_s3, 256, %s2053_s16, [#allocation7], %s1919_s19, %s1919_s19, %s1920_s20  }
  0x47   : > { %s1750_s26 = scalar_lea.hbm %s2428_s7, 256 }
  0x48   : > { %p1751_p6 = scmp.ne.s32.totalorder %s2428_s7, %s1750_s26  ;;  %p1757_p5 = scmp.lt.u32.totalorder %s1750_s26, %s2428_s7 }
  0x4a   : > { %p1753_p10 = pnand %p1751_p6, %p2065_p13 }
  0x4c   : > { %p1754_p3 = pneg %p1753_p10 }
  0x4e   : > { %p1759_p7 = pnand %p1757_p5, %p1754_p3 }
  0x50   : > { %1762 = shalt.err (!%p1759_p7)
}
  0x51   : > { %s1763_s13 = scalar_lea.vmem %s378_s18, 256  ;;  %p1771_p1 = scmp.lt.s32.totalorder %s378_s18, %s378_s18 }
  0x52   : > { %p1764_p9 = scmp.ne.s32.totalorder %s378_s18, %s1763_s13  ;;  %p1772_p2 = scmp.lt.s32.totalorder %s1763_s13, %s1763_s13 }
  0x54   : > { %p1766_p12 = pnand %p1764_p9, %p2065_p13  ;;  %p1773_p4 = por %p1772_p2, %p1771_p1 }
  0x56   : > { %p1767_p0 = pneg %p1766_p12 }
  0x58   : > { %p1774_p8 = pnand %p1773_p4, %p1767_p0 }
  0x5a   : > { %1777 = shalt.err (!%p1774_p8)
}
  0x5b   : > { %1602 = dma.hbm_to_vmem [thread:$0]  (!%p2049_p11), %s2428_s7, 256, %s378_s18, [#allocation10], %s1919_s19, %s1919_s19, %s1920_s20  }
  0x5c   : > { %s2138_s21 = sadd.s32 1, %s1914_s24   ;;  %s41_s10 = sadd.s32 1, %s1910_s23 }
  0x5d   : > { %s38_s14 = ssub.s32 %s1914_s24, %s2138_s21  ;;  %p48_p8 = scmp.ne.s32.totalorder %s1910_s23, %s1906_s22 }
  0x5e   : > { %p39_p4 = scmp.eq.s32.totalorder %s38_s14, 0  ;;  %p49_p13 = scmp.eq.s32.totalorder %s1914_s24, 0 }
  0x5f   : > { %p1617_p6 = scmp.lt.s32.totalorder %s1914_s24, 2  ;;  %p2453_p3 = scmp.eq.s32.totalorder %s2019_s25, 1 }
  0x60   : > { %s2148_s11 = scalar_select %p39_p4, %s1910_s23, %s41_s10  }
  0x61   : > { %p50_p10 = por %p49_p13, %p48_p8  ;;  %p2152_p5 = por %p2453_p3, %p48_p8 }
  0x62   : > { %s400_s26 = sand.u32 1, %s1910_s23   ;;  %s1422_s30 = sshll.u32 %s1914_s24, 7 }
  0x63   : > { %s1421_s18 = sshll.u32 %s400_s26, 3  ;;  %s2455_s0 = sld [smem:[#allocation21_spill]] }
  0x64   : > { %s404_s17 = scalar_lea.vmem [#allocation3], %s1421_s18  ;;  %p2163_p11 = pnand %p1617_p6, %p50_p10 }
  0x65   : > { %s411_s28 = sshll.u32 %s404_s17, 4  ;;  %s401_s16 = scalar_lea.sflag [#allocation4], %s400_s26  ;;  %s2167_s28 = int_to_ptr.vmem [resolvable:$true] %s411_s28 }
  0x66   : > { %p1780_p9 = pneg %p2163_p11 }
  0x69   : > { %s2161_s15 = scalar_lea.hbm %s2455_s0, %s1422_s30  ;;  %s1783_s30 = scalar_lea.hbm %s2455_s0, 256 }
  0x6a   : > { %s1778_s9 = scalar_lea.hbm %s2161_s15, 128  ;;  %p1784_p1 = scmp.lt.u32.totalorder %s2161_s15, %s2455_s0 }
  0x6b   : > { %p1779_p7 = scmp.ne.s32.totalorder %s2161_s15, %s1778_s9  ;;  %p1785_p2 = scmp.lt.u32.totalorder %s1783_s30, %s1778_s9 }
  0x6c   : > { %p1787_p8 = scmp.lt.u32.totalorder %s1778_s9, %s2161_s15 }
  0x6d   : > { %p1781_p12 = pnand %p1780_p9, %p1779_p7  ;;  %p1786_p4 = por %p1785_p2, %p1784_p1 }
  0x6f   : > { %p1782_p0 = pneg %p1781_p12  ;;  %p1788_p13 = por %p1787_p8, %p1786_p4 }
  0x71   : > { %p1789_p6 = pnand %p1788_p13, %p1782_p0 }
  0x73   : > { %1792 = shalt.err (!%p1789_p6)
}
  0x74   : > { %s1793_s26 = scalar_lea.vmem %s2167_s28, 128  ;;  %s1921_s20 = smov [#allocation3]  }
  0x75   : > { %p1794_p10 = scmp.ne.s32.totalorder %s2167_s28, %s1793_s26  ;;  %s1798_s17 = sshll.u32 %s1921_s20, 4  ;;  %s1799_s17 = int_to_ptr.vmem [resolvable:$false] %s1798_s17 }
  0x76   : > { %s1800_s14 = scalar_lea.vmem %s1799_s17, 256  ;;  %p1801_p12 = scmp.lt.s32.totalorder %s2167_s28, %s1799_s17 }
  0x77   : > { %p1796_p3 = pnand %p1794_p10, %p1780_p9  ;;  %p1802_p1 = scmp.lt.s32.totalorder %s1800_s14, %s1793_s26 }
  0x79   : > { %p1797_p7 = pneg %p1796_p3  ;;  %p1803_p2 = por %p1802_p1, %p1801_p12 }
  0x7b   : > { %p1804_p4 = pnand %p1803_p2, %p1797_p7 }
  0x7d   : > { %1807 = shalt.err (!%p1804_p4)
}
  0x7e   : > { %1606 = dma.hbm_to_vmem [thread:$0]  (!%p2163_p11), %s2161_s15, 128, %s2167_s28, %s401_s16  }
  0x7f   : > { %p2457_p0 = scmp.ne.s32.totalorder %s2450_s29, 0 }
  0x80   : > { %s2197_s9 = sand.u32 (!%p2457_p0), 1, %s1906_s22   ;;  %p2458_p9 = scmp.ne.s32.totalorder (!%p2457_p0), %s2447_s27, 0 }
  0x81   : > { %420 = sbr.rel (%p2457_p0) target bundleno = 1918 (0x77e), region = 64  ;;  %s1424_s10 = sshll.u32 (!%p2457_p0), %s2197_s9, 3 }
  0x82   : > { %s423_s30 = scalar_lea.sflag (!%p2457_p0), [#allocation4], %s2197_s9  ;;  %s426_s18 = scalar_lea.vmem (!%p2457_p0), [#allocation3], %s1424_s10 }
  0x88   : > { %1881 = dma.done.wait (%p2458_p9), %s423_s30, 128  }
  0x89   : > { %1883 = vsyncadd (%p2458_p9), %s423_s30, 4294967168  ;;  %p2459_p11 = scmp.eq.s32.totalorder %s2019_s25, 0 }
  0x8b   : > { %1885 = dma.done.wait (%p2459_p11), [#allocation7], 512   ;;  %p2460_p8 = pmov %p2459_p11 }
  0x8d   : > { %1887 = vsyncadd (%p2460_p8), [#allocation7], 4294966784  ;;  %p2461_p13 = pmov %p2460_p8 }
  0x8e   : > { %p2462_p6 = pmov %p2460_p8 }
  0x8f   : > { %1889 = dma.done.wait (%p2461_p13), [#allocation10], 256  }
  0x90   : > { %1891 = vsyncadd (%p2462_p6), [#allocation10], 4294967040  ;;  %v1922_v0 = vmov 0.0   ;;  %vm1923_vm0 = vmmov 0   ;;  %v1668_v1 = vld [vmem:[#allocation8] sm:$0xff]   ;;  %v1669_v2 = vld [vmem:[#allocation6] sm:$0xff]  }
  0x91   : > { %1503 = vmatprep.subr.bf16.mxu1 %v1922_v0  ;;  %1495 = vmatprep.subr.bf16.mxu0 %v1922_v0  ;;  %v1670_v3 = vld [vmem:[#allocation8 + $0x8] sm:$0xff]   ;;  %v1671_v4 = vld [vmem:[#allocation6 + $0x8] sm:$0xff]   ;;  %vm510_vm1 = vcmask 261120   ;;  %vm684_vm2 = vcmask 64512   ;;  %s1924_s13 = smov 112   ;;  %s1925_s16 = smov 120  }
  0x92   : > { %1507 = vmatprep.mubr.msk.bf16.mxu1 %vm1923_vm0, %v1922_v0  ;;  %1499 = vmatprep.mubr.msk.bf16.mxu0 %vm1923_vm0, %v1922_v0  ;;  %v2223_v5 = vld [vmem:[%s426_s18] sm:$0xff]  ;;  %v1434_v7 = vld [vmem:[%s2425_s4] ss:$0 sm:$0xff]  ;;  %s1926_s19 = smov 104   ;;  %vm747_vm3 = vcmask 1043456   ;;  %s1429_s27 = sshll.u32 %s2197_s9, 5 }
  0x93   : > { %1504 = vmatpush3.bf16.msra.mxu1 %v1668_v1  ;;  %1496 = vmatpush3.bf16.msra.mxu0 %v1669_v2  ;;  %v486_v6 = vpack.c.bf16 %v2223_v5, %v2223_v5  ;;  %v1430_v8 = vld [vmem:[%s2423_s2] ss:$0 sm:$0xff]  ;;  %v1673_v24 = vld [vmem:[%s2426_s5 + $0x8] sm:$0xff]   ;;  %s2295_s29 = scalar_lea.vmem [#allocation12], %s1429_s27  ;;  %s1927_s15 = smov 8   ;;  %vm911_vm4 = vcmask 130112  }
  0x94   : > { %1505 = vmatprep.subr.bf16.mxu1 %v1922_v0  ;;  %1497 = vmatprep.subr.bf16.mxu0 %v1922_v0  ;;  %v1672_v23 = vld [vmem:[%s2426_s5] sm:$0xff]   ;;  %s1928_s28 = smov 16   ;;  %vm1029_vm5 = vcmask 195712   ;;  %vm1147_vm6 = vcmask 261312   ;;  %s1466_s26 = sshll.u32 %s2019_s25, 9 }
  0x95   : > { %v1438_v39 = vld [vmem:[%s2427_s6] ss:$0 sm:$0xff]  ;;  %s1281_s20 = sshll.u32 %s2295_s29, 4  ;;  %s2463_s30 = sld [smem:[#allocation25_spill]]  ;;  %s2337_s20 = int_to_ptr.vmem [resolvable:$true] %s1281_s20 }
  0x96   : > { %s1255_s27 = scalar_lea.sflag [#allocation13], %s2197_s9 }
  0x97   : > { %1506 = vmatpush3.bf16.msra.mxu1 %v1670_v3  ;;  %1498 = vmatpush3.bf16.msra.mxu0 %v1671_v4 }
  0x98   : > { %1519 = vmatprep.subr.bf16.mxu1 %v1922_v0  ;;  %1511 = vmatprep.subr.bf16.mxu0 %v1922_v0 }
  0x9a   : > { %1508 = vmatmul.mubr.msk.bf16.vlgmr.msra.gmra.mrb[0].mxu1 %vm510_vm1, %v486_v6  ;;  %1500 = vmatmul.mubr.msk.bf16.vlgmr.msra.gmra.mrb[0].mxu0 %vm510_vm1, %v486_v6 }
  0x9b   : > { %1521 = vmatprep.mubr.msk.bf16.mxu1 %vm1923_vm0, %v1922_v0  ;;  %1515 = vmatprep.mubr.msk.bf16.mxu0 %vm1923_vm0, %v1922_v0  ;;  %s2335_s18 = scalar_lea.hbm %s2463_s30, %s1466_s26 }
  0x9c   : > { %1512 = vmatpush3.bf16.msra.mxu0 %v1672_v23 }
  0x9d   : > { %1513 = vmatprep.subr.bf16.mxu0 %v1922_v0 }
  0xa0   : > { %1514 = vmatpush3.bf16.msra.mxu0 %v1673_v24 }
  0xa1   : > { %1525 = vmatprep.subr.bf16.mxu0 %v1922_v0 }
  0xa3   : > { %1516 = vmatmul.mubr.msk.bf16.vlgmr.msra.gmra.mrb[4].mxu0 %vm510_vm1, %v486_v6 }
  0xa4   : > { %1527 = vmatprep.mubr.msk.bf16.mxu0 %vm1923_vm0, %v1922_v0 }
 0x16d   : > { %v611_v9 = vpop.f32.mrb[0].mxu1  ;;  %v548_v12 = vpop.f32.mrb[0].mxu0 }
 0x16e   : > { %v612_v10 = vadd.f32 %v1434_v7, %v611_v9  ;;  %v1509_v11 = vpop.f32.mrb[1].mxu1  ;;  %v549_v13 = vadd.f32 %v1430_v8, %v548_v12  ;;  %v1501_v15 = vpop.f32.mrb[1].mxu0 }
 0x16f   : > { %v614_v14 = vpop.f32.mrb[2].mxu1  ;;  %v551_v18 = vpop.f32.mrb[2].mxu0 }
 0x170   : > { %v682_v16 = vpack.c.bf16 %v612_v10, %v612_v10  ;;  %v1510_v17 = vpop.f32.mrb[3].mxu1  ;;  %v680_v19 = vmul.f32 0.35355338, %v549_v13  ;;  %v1502_v20 = vpop.f32.mrb[3].mxu0 }
 0x172   : > { %915 = vrot.lane.b32.xlu1 %v682_v16, %s1924_s13  ;;  %796 = vrot.lane.b32.xlu0 %v682_v16, %s1925_s16  ;;  %v689_v21 = vsel %vm684_vm2, %v682_v16, 0  ;;  %v681_v22 = vpack.c.bf16 %v680_v19, %v680_v19 }
 0x173   : > { %1520 = vmatpush3.bf16.xpose.msra.mxu1 %v689_v21 }
 0x174   : > { %1531 = vmatprep.subr.bf16.mxu1 %v1922_v0 }
 0x176   : > { %913 = vrot.lane.b32.xlu1 %v681_v22, %s1924_s13  ;;  %793 = vrot.lane.b32.xlu0 %v681_v22, %s1925_s16  ;;  %v674_v40 = vpop.f32.mrb[4].mxu0 }
 0x177   : > { %v675_v41 = vadd.f32 %v1438_v39, %v674_v40  ;;  %v1517_v42 = vpop.f32.mrb[5].mxu0 }
 0x178   : > { %v677_v43 = vpop.f32.mrb[6].mxu0 }
 0x179   : > { %v683_v44 = vpack.c.bf16 %v675_v41, %v675_v41  ;;  %v1518_v45 = vpop.f32.mrb[7].mxu0 }
 0x17a   : > { %1031 = vrot.lane.b32.xlu1 %v681_v22, %s1926_s19  ;;  %1033 = vrot.lane.b32.xlu0 %v682_v16, %s1926_s19 }
 0x17b   : > { %1522 = vmatmul.mubr.msk.bf16.vlgmr.msra.gmra.mrb[4].mxu1 %vm684_vm2, %v681_v22  ;;  %v749_v46 = vsel %vm747_vm3, %v683_v44, 0 }
 0x17c   : > { %1533 = vmatprep.mubr.msk.bf16.mxu1 %vm1923_vm0, %v1922_v0  ;;  %1526 = vmatpush3.bf16.msra.mxu0 %v749_v46 }
 0x17d   : > { %1537 = vmatprep.subr.bf16.mxu0 %v1922_v0 }
 0x1e4   : > { %v797_v25 = vpop.permute.xlu0 %796  ;;  %v916_v27 = vpop.permute.xlu1 %915 }
 0x1e5   : > { %v802_v26 = vsel %vm684_vm2, %v797_v25, 0  ;;  %v921_v29 = vsel %vm684_vm2, %v916_v27, 0 }
 0x1e6   : > { %1532 = vmatpush3.bf16.xpose.msra.mxu1 %v802_v26 }
 0x1e7   : > { %1543 = vmatprep.subr.bf16.mxu1 %v1922_v0 }
 0x1e8   : > { %v794_v28 = vpop.permute.xlu0 %793  ;;  %v914_v31 = vpop.permute.xlu1 %913 }
 0x1ec   : > { %v1034_v30 = vpop.permute.xlu0 %1033  ;;  %v1032_v33 = vpop.permute.xlu1 %1031 }
 0x1ed   : > { %1534 = vmatmul.mubr.msk.bf16.vlgmr.msra.gmra.mrb[8].mxu1 %vm684_vm2, %v794_v28  ;;  %v1039_v32 = vsel %vm684_vm2, %v1034_v30, 0 }
 0x1ee   : > { %1544 = vmatpush3.bf16.xpose.msra.mxu1 %v921_v29  ;;  %1545 = vmatprep.mubr.msk.bf16.mxu1 %vm1923_vm0, %v1922_v0 }
 0x1ef   : > { %1555 = vmatprep.subr.bf16.mxu1 %v1922_v0 }
 0x1f5   : > { %1546 = vmatmul.mubr.msk.bf16.vlgmr.msra.gmra.mrb[12].mxu1 %vm684_vm2, %v914_v31 }
 0x1f6   : > { %1556 = vmatpush3.bf16.xpose.msra.mxu1 %v1039_v32  ;;  %1557 = vmatprep.mubr.msk.bf16.mxu1 %vm1923_vm0, %v1922_v0 }
 0x1f7   : > { %1567 = vmatprep.subr.bf16.mxu1 %v1922_v0 }
 0x1fd   : > { %1558 = vmatmul.mubr.msk.bf16.vlgmr.msra.gmra.mrb[16].mxu1 %vm684_vm2, %v1032_v33 }
 0x1fe   : > { %1571 = vmatprep.mubr.msk.bf16.mxu1 %vm1923_vm0, %v1922_v0 }
 0x24e   : > { %v725_v34 = vpop.f32.mrb[4].mxu1 }
 0x24f   : > { %v1523_v35 = vpop.f32.mrb[5].mxu1  ;;  %v731_v36 = vsel %vm684_vm2, %v725_v34, -inf }
 0x250   : > { %732 = vmax.xlane.f32.xlu0 %v731_v36  ;;  %v728_v37 = vpop.f32.mrb[6].mxu1 }
 0x251   : > { %v1524_v38 = vpop.f32.mrb[7].mxu1 }
 0x2c0   : > { %v838_v47 = vpop.f32.mrb[8].mxu1 }
 0x2c1   : > { %v1535_v48 = vpop.f32.mrb[9].mxu1  ;;  %v844_v49 = vsel %vm684_vm2, %v838_v47, -inf }
 0x2c2   : > { %845 = vmax.xlane.f32.xlu1 %v844_v49  ;;  %v841_v50 = vpop.f32.mrb[10].mxu1 }
 0x2c3   : > { %v1536_v51 = vpop.f32.mrb[11].mxu1  ;;  %v1674_v50 = vld [vmem:[#allocation9] sm:$0xff]  }
 0x2c4   : > { %1568 = vmatpush3.bf16.msra.mxu1 %v1674_v50  ;;  %v1675_v51 = vld [vmem:[#allocation9 + $0x8] sm:$0xff]  }
 0x2c5   : > { %1569 = vmatprep.subr.bf16.mxu1 %v1922_v0 }
 0x2c8   : > { %v957_v52 = vpop.f32.mrb[12].mxu1  ;;  %1570 = vmatpush3.bf16.msra.mxu1 %v1675_v51 }
 0x2c9   : > { %v1547_v53 = vpop.f32.mrb[13].mxu1  ;;  %v963_v54 = vsel %vm684_vm2, %v957_v52, -inf }
 0x2ca   : > { %964 = vmax.xlane.f32.xlu0 %v963_v54  ;;  %v960_v55 = vpop.f32.mrb[14].mxu1 }
 0x2cb   : > { %v1548_v56 = vpop.f32.mrb[15].mxu1 }
 0x2d0   : > { %v1075_v57 = vpop.f32.mrb[16].mxu1 }
 0x2d1   : > { %v1559_v58 = vpop.f32.mrb[17].mxu1  ;;  %v1081_v59 = vsel %vm684_vm2, %v1075_v57, -inf }
 0x2d2   : > { %1082 = vmax.xlane.f32.xlu0 %v1081_v59  ;;  %v1078_v60 = vpop.f32.mrb[18].mxu1 }
 0x2d3   : > { %v1560_v61 = vpop.f32.mrb[19].mxu1 }
 0x2dd   : > { %v733_v62 = vpop.xlane.xlu0 %732 }
 0x2de   : > { %v734_v63 = vsub.f32 %v725_v34, %v733_v62 }
 0x2e0   : > { %v735_v1 = vmul.f32 1.442695, %v734_v63 }
 0x2e2   : > { %1676 = vpow2.f32 %v735_v1  ;;  %v1453_v1 = vld [vmem:[%s2429_s8] ss:$0 sm:$0xff] }
 0x2ec   : > { %v1677_v2 = vpop.eup %1676 }
 0x2ed   : > { %v737_v3 = vsel %vm684_vm2, %v1677_v2, 0.0 }
 0x2ee   : > { %738 = vadd.xlane.f32.xlu1 %v737_v3 }
 0x2ff   : > { %859 = vrot.lane.b32.xlu1 %v683_v44, %s1925_s16 }
 0x34f   : > { %v846_v4 = vpop.xlane.xlu1 %845 }
 0x350   : > { %v847_v6 = vsub.f32 %v838_v47, %v846_v4 }
 0x352   : > { %v848_v7 = vmul.f32 1.442695, %v847_v6 }
 0x354   : > { %1678 = vpow2.f32 %v848_v7 }
 0x357   : > { %v965_v8 = vpop.xlane.xlu0 %964 }
 0x358   : > { %v966_v9 = vsub.f32 %v957_v52, %v965_v8 }
 0x35a   : > { %v967_v10 = vmul.f32 1.442695, %v966_v9 }
 0x35c   : > { %1680 = vpow2.f32 %v967_v10 }
 0x35e   : > { %v1679_v11 = vpop.eup %1678 }
 0x35f   : > { %v1083_v12 = vpop.xlane.xlu0 %1082  ;;  %v850_v13 = vsel %vm684_vm2, %v1679_v11, 0.0 }
 0x360   : > { %v1084_v14 = vsub.f32 %v1075_v57, %v1083_v12  ;;  %851 = vadd.xlane.f32.xlu0 %v850_v13 }
 0x362   : > { %v1085_v15 = vmul.f32 1.442695, %v1084_v14 }
 0x364   : > { %1682 = vpow2.f32 %v1085_v15 }
 0x366   : > { %v1681_v16 = vpop.eup %1680 }
 0x367   : > { %v969_v17 = vsel %vm684_vm2, %v1681_v16, 0.0 }
 0x368   : > { %970 = vadd.xlane.f32.xlu1 %v969_v17 }
 0x36e   : > { %v1683_v18 = vpop.eup %1682 }
 0x36f   : > { %v1087_v19 = vsel %vm684_vm2, %v1683_v18, 0.0 }
 0x370   : > { %1088 = vadd.xlane.f32.xlu0 %v1087_v19 }
 0x379   : > { %1095 = vrot.lane.b32.xlu1 %v683_v44, %s1926_s19 }
 0x37b   : > { %v739_v20 = vpop.xlane.xlu1 %738 }
 0x37c   : > { %1684 = vrcp.f32 %v739_v20 }
 0x37f   : > { %v860_v22 = vpop.permute.xlu1 %859 }
 0x380   : > { %v865_v25 = vsel %vm747_vm3, %v860_v22, 0 }
 0x386   : > { %v1685_v21 = vpop.eup %1684  ;;  %977 = vrot.lane.b32.xlu0 %v683_v44, %s1924_s13  ;;  %s1929_s13 = smov 24  }
 0x387   : > { %v741_v23 = vmul.f32 %v1685_v21, %v1677_v2 }
 0x389   : > { %742 = vst.msk [vmem:[%s2295_s29] sm:$0xff] %vm684_vm2, %v741_v23  ;;  %v743_v24 = vpack.c.bf16 %v741_v23, %v741_v23 }
 0x38b   : > { %1528 = vmatmul.mubr.msk.bf16.vlgmr.msra.gmra.mrb[8].mxu0 %vm684_vm2, %v743_v24 }
 0x38c   : > { %1538 = vmatpush3.bf16.msra.mxu0 %v865_v25  ;;  %1539 = vmatprep.mubr.msk.bf16.mxu0 %vm1923_vm0, %v1922_v0 }
 0x38d   : > { %1549 = vmatprep.subr.bf16.mxu0 %v1922_v0 }
 0x3ed   : > { %v852_v26 = vpop.xlane.xlu0 %851 }
 0x3ee   : > { %1686 = vrcp.f32 %v852_v26 }
 0x3f5   : > { %v971_v27 = vpop.xlane.xlu1 %970 }
 0x3f6   : > { %1688 = vrcp.f32 %v971_v27 }
 0x3f8   : > { %v1687_v28 = vpop.eup %1686 }
 0x3f9   : > { %v854_v29 = vmul.f32 %v1687_v28, %v1679_v11  ;;  %v1096_v36 = vpop.permute.xlu1 %1095 }
 0x3fa   : > { %v1101_v38 = vsel %vm747_vm3, %v1096_v36, 0 }
 0x3fb   : > { %1445 = vst.msk [vmem:[%s2295_s29 + $0x8] sm:$0xff] %vm684_vm2, %v854_v29  ;;  %v857_v30 = vpack.c.bf16 %v854_v29, %v854_v29 }
 0x3fd   : > { %v1089_v31 = vpop.xlane.xlu0 %1088  ;;  %1540 = vmatmul.mubr.msk.bf16.vlgmr.msra.gmra.mrb[12].mxu0 %vm684_vm2, %v857_v30 }
 0x3fe   : > { %1690 = vrcp.f32 %v1089_v31  ;;  %1551 = vmatprep.mubr.msk.bf16.mxu0 %vm1923_vm0, %v1922_v0 }
 0x400   : > { %v1689_v32 = vpop.eup %1688 }
 0x401   : > { %v973_v33 = vmul.f32 %v1689_v32, %v1681_v16  ;;  %v978_v34 = vpop.permute.xlu0 %977 }
 0x402   : > { %v983_v35 = vsel %vm747_vm3, %v978_v34, 0 }
 0x403   : > { %1448 = vst.msk [vmem:[%s2295_s29 + $0x10] sm:$0xff] %vm684_vm2, %v973_v33  ;;  %1550 = vmatpush3.bf16.msra.mxu0 %v983_v35  ;;  %v976_v37 = vpack.c.bf16 %v973_v33, %v973_v33 }
 0x404   : > { %1561 = vmatprep.subr.bf16.mxu0 %v1922_v0 }
 0x406   : > { %1552 = vmatmul.mubr.msk.bf16.vlgmr.msra.gmra.mrb[16].mxu0 %vm684_vm2, %v976_v37 }
 0x407   : > { %1562 = vmatpush3.bf16.msra.mxu0 %v1101_v38  ;;  %1563 = vmatprep.mubr.msk.bf16.mxu0 %vm1923_vm0, %v1922_v0 }
 0x408   : > { %v1691_v39 = vpop.eup %1690 }
 0x409   : > { %v1091_v40 = vmul.f32 %v1691_v39, %v1683_v18 }
 0x40b   : > { %1451 = vst.msk [vmem:[%s2295_s29 + $0x18] sm:$0xff] %vm684_vm2, %v1091_v40  ;;  %v1094_v41 = vpack.c.bf16 %v1091_v40, %v1091_v40 }
 0x40e   : > { %1564 = vmatmul.mubr.msk.bf16.vlgmr.msra.gmra.mrb[20].mxu0 %vm684_vm2, %v1094_v41 }
 0x45e   : > { %v785_v42 = vpop.f32.mrb[8].mxu0 }
 0x45f   : > { %791 = vst.msk [vmem:[#allocation2] sm:$0xff] %vm684_vm2, %v785_v42  ;;  %v1529_v43 = vpop.f32.mrb[9].mxu0 }
 0x460   : > { %v788_v44 = vpop.f32.mrb[10].mxu0 }
 0x461   : > { %v1530_v45 = vpop.f32.mrb[11].mxu0 }
 0x4d0   : > { %v901_v46 = vpop.f32.mrb[12].mxu0 }
 0x4d1   : > { %908 = vrot.lane.b32.xlu1 %v901_v46, %s1927_s15  ;;  %v1541_v47 = vpop.f32.mrb[13].mxu0 }
 0x4d2   : > { %v904_v48 = vpop.f32.mrb[14].mxu0 }
 0x4d3   : > { %v1542_v49 = vpop.f32.mrb[15].mxu0 }
 0x4d9   : > { %v1019_v52 = vpop.f32.mrb[16].mxu0 }
 0x4da   : > { %1026 = vrot.lane.b32.xlu0 %v1019_v52, %s1928_s28  ;;  %v1553_v53 = vpop.f32.mrb[17].mxu0  ;;  %s1808_s28 = scalar_lea.vmem %s2337_s20, 512 }
 0x4db   : > { %v1022_v54 = vpop.f32.mrb[18].mxu0  ;;  %p1809_p10 = scmp.ne.s32.totalorder %s2337_s20, %s1808_s28 }
 0x4dc   : > { %v1554_v55 = vpop.f32.mrb[19].mxu0 }
 0x4dd   : > { %p1810_p3 = pnand %p1809_p10, %p2152_p5 }
 0x4df   : > { %p1811_p7 = pneg %p1810_p3 }
 0x4e1   : > { %v1137_v56 = vpop.f32.mrb[20].mxu0 }
 0x4e2   : > { %1144 = vrot.lane.b32.xlu1 %v1137_v56, %s1929_s13  ;;  %v1565_v57 = vpop.f32.mrb[21].mxu0  ;;  %s1930_s13 = smov [#allocation12]  }
 0x4e3   : > { %v1140_v58 = vpop.f32.mrb[22].mxu0  ;;  %s1812_s16 = sshll.u32 %s1930_s13, 4  ;;  %s1813_s16 = int_to_ptr.vmem [resolvable:$false] %s1812_s16 }
 0x4e4   : > { %v1566_v59 = vpop.f32.mrb[23].mxu0  ;;  %s1814_s29 = scalar_lea.vmem %s1813_s16, 1024  ;;  %p1815_p12 = scmp.lt.s32.totalorder %s2337_s20, %s1813_s16 }
 0x4e5   : > { %p1816_p1 = scmp.lt.s32.totalorder %s1814_s29, %s1808_s28 }
 0x4e7   : > { %p1817_p2 = por %p1816_p1, %p1815_p12 }
 0x4e9   : > { %p1818_p4 = pnand %p1817_p2, %p1811_p7 }
 0x543   : > { %v909_v60 = vpop.permute.xlu1 %908 }
 0x544   : > { %912 = vst.msk [vmem:[#allocation2] sm:$0xff] %vm911_vm4, %v909_v60 }
 0x54c   : > { %v1027_v61 = vpop.permute.xlu0 %1026 }
 0x54d   : > { %1030 = vst.msk [vmem:[#allocation2] sm:$0xff] %vm1029_vm5, %v1027_v61 }
 0x554   : > { %v1145_v0 = vpop.permute.xlu1 %1144 }
 0x555   : > { %1148 = vst.msk [vmem:[#allocation2] sm:$0xff] %vm1147_vm6, %v1145_v0 }
 0x55c   : > { %v1149_v62 = vld [vmem:[#allocation2] sm:$0xff] }
 0x55d   : > { %v1150_v63 = vpack.c.bf16 %v1149_v62, %v1149_v62 }
 0x55f   : > { %1572 = vmatmul.mubr.msk.bf16.vlgmr.msra.gmra.mrb[20].mxu1 %vm510_vm1, %v1150_v63 }
 0x632   : > { %v1211_v2 = vpop.f32.mrb[20].mxu1 }
 0x633   : > { %v1212_v3 = vadd.f32 %v1453_v1, %v1211_v2  ;;  %v1573_v4 = vpop.f32.mrb[21].mxu1 }
 0x634   : > { %v1214_v6 = vpop.f32.mrb[22].mxu1 }
 0x635   : > { %v1574_v7 = vpop.f32.mrb[23].mxu1  ;;  %v1217_v8 = vadd.f32 %v1212_v3, %v2223_v5 }
 0x637   : > { %v1218_v9 = vsel %vm510_vm1, %v1217_v8, 0.0 }
 0x638   : > { %1219 = vadd.xlane.f32.xlu0 %v1218_v9 }
 0x6c5   : > { %v1220_v10 = vpop.xlane.xlu0 %1219 }
 0x6c6   : > { %v1222_v11 = vmul.f32 0.03125, %v1220_v10 }
 0x6c8   : > { %v1223_v12 = vsub.f32 %v1217_v8, %v1222_v11 }
 0x6ca   : > { %v1224_v13 = vmul.f32 %v1223_v12, %v1223_v12 }
 0x6cc   : > { %v1225_v14 = vsel %vm510_vm1, %v1224_v13, 0.0 }
 0x6cd   : > { %1226 = vadd.xlane.f32.xlu1 %v1225_v14 }
 0x6ce   : > { %1821 = shalt.err (!%p1818_p4)
}
 0x6cf   : > { %s1822_s19 = scalar_lea.hbm %s2335_s18, 512  ;;  %s1826_s14 = scalar_lea.hbm %s2463_s30, 1024 }
 0x6d0   : > { %p1823_p0 = scmp.ne.s32.totalorder %s2335_s18, %s1822_s19  ;;  %p1827_p8 = scmp.lt.u32.totalorder %s2335_s18, %s2463_s30 }
 0x6d1   : > { %p1828_p13 = scmp.lt.u32.totalorder %s1826_s14, %s1822_s19  ;;  %p1830_p10 = scmp.lt.u32.totalorder %s1822_s19, %s2335_s18 }
 0x6d2   : > { %p1824_p9 = pnand %p1823_p0, %p2152_p5 }
 0x6d3   : > { %p1829_p6 = por %p1828_p13, %p1827_p8 }
 0x6d4   : > { %p1825_p11 = pneg %p1824_p9 }
 0x6d5   : > { %p1831_p3 = por %p1830_p10, %p1829_p6 }
 0x6d7   : > { %p1832_p7 = pnand %p1831_p3, %p1825_p11 }
 0x6d9   : > { %1835 = shalt.err (!%p1832_p7)
}
 0x6da   : > { %s1931_s28 = smov 128   ;;  %s2464_s26 = sld [smem:[#allocation22_spill]] }
 0x6db   : > { %1590 = dma.vmem_to_hbm [thread:$0]  (%p2152_p5), %s2337_s20, 512, %s2335_s18, %s1255_s27, %s1931_s28, %s1931_s28, %s1927_s15  }
 0x6dc   : > { %s2465_s13 = sld [smem:[#allocation23_spill]]  ;;  %s1461_s16 = sshll.u32 %s2019_s25, 7 }
 0x6dd   : > { %s476_s0 = scalar_lea.vmem [#allocation11], %s1424_s10  ;;  %s2466_s27 = sld [smem:[#allocation24_spill]] }
 0x6de   : > { %s1268_s15 = sshll.u32 %s476_s0, 4  ;;  %s1250_s29 = scalar_lea.sflag [#allocation5], %s2197_s9  ;;  %s2378_s15 = int_to_ptr.vmem [resolvable:$true] %s1268_s15 }
 0x6df   : > { %s1836_s19 = scalar_lea.vmem %s2378_s15, 128  ;;  %s1932_s25 = smov [#allocation11]  }
 0x6e0   : > { %v1457_v18 = vld [vmem:[%s2464_s26] ss:$0 sm:$0xff]  ;;  %p1837_p12 = scmp.ne.s32.totalorder %s2378_s15, %s1836_s19  ;;  %s1840_s10 = sshll.u32 %s1932_s25, 4  ;;  %s1841_s10 = int_to_ptr.vmem [resolvable:$false] %s1840_s10 }
 0x6e1   : > { %s1842_s26 = scalar_lea.vmem %s1841_s10, 256  ;;  %p1843_p4 = scmp.lt.s32.totalorder %s2378_s15, %s1841_s10 }
 0x6e2   : > { %v1458_v20 = vld [vmem:[%s2465_s13] ss:$0 sm:$0xff]  ;;  %p1838_p1 = pnand %p1837_p12, %p2152_p5  ;;  %p1844_p0 = scmp.lt.s32.totalorder %s1842_s26, %s1836_s19 }
 0x6e3   : > { %s2376_s28 = scalar_lea.hbm %s2466_s27, %s1461_s16 }
 0x6e4   : > { %p1839_p2 = pneg %p1838_p1  ;;  %p1845_p9 = por %p1844_p0, %p1843_p4 }
 0x6e6   : > { %p1846_p11 = pnand %p1845_p9, %p1839_p2 }
 0x75a   : > { %v1227_v5 = vpop.xlane.xlu1 %1226 }
 0x75b   : > { %v1228_v15 = vmul.f32 0.03125, %v1227_v5 }
 0x75d   : > { %v1229_v16 = vadd.f32 1e-05, %v1228_v15 }
 0x75f   : > { %1692 = vrsqrt.f32 %v1229_v16 }
 0x769   : > { %v1693_v17 = vpop.eup %1692 }
 0x76a   : > { %v1231_v19 = vmul.f32 %v1693_v17, %v1223_v12 }
 0x76c   : > { %v1239_v21 = vmul.f32 %v1457_v18, %v1231_v19 }
 0x76e   : > { %v1247_v22 = vadd.f32 %v1458_v20, %v1239_v21 }
 0x770   : > { %1248 = vst.msk [vmem:[%s476_s0] sm:$0xff] %vm510_vm1, %v1247_v22 }
 0x771   : > { %1849 = shalt.err (!%p1846_p11)
}
 0x772   : > { %s1850_s0 = scalar_lea.hbm %s2376_s28, 128  ;;  %s1854_s14 = scalar_lea.hbm %s2466_s27, 256 }
 0x773   : > { %p1851_p8 = scmp.ne.s32.totalorder %s2376_s28, %s1850_s0  ;;  %p1855_p10 = scmp.lt.u32.totalorder %s2376_s28, %s2466_s27 }
 0x774   : > { %p1856_p3 = scmp.lt.u32.totalorder %s1854_s14, %s1850_s0  ;;  %p1858_p12 = scmp.lt.u32.totalorder %s1850_s0, %s2376_s28 }
 0x775   : > { %p1852_p13 = pnand %p1851_p8, %p2152_p5 }
 0x776   : > { %p1857_p7 = por %p1856_p3, %p1855_p10 }
 0x777   : > { %p1853_p6 = pneg %p1852_p13 }
 0x778   : > { %p1859_p1 = por %p1858_p12, %p1857_p7 }
 0x77a   : > { %p1860_p2 = pnand %p1859_p1, %p1853_p6 }
 0x77c   : > { %1863 = shalt.err (!%p1860_p2)
}
 0x77d   : > { %1589 = dma.vmem_to_hbm [thread:$0]  (%p2152_p5), %s2378_s15, 128, %s2376_s28, %s1250_s29  }
 0x77e PF: > { %s2467_s20 = sld [smem:[#allocation19_spill]]  ;;  %s2468_s18 = sld [smem:[#allocation20_spill]] }
 0x77f   : > { %p2470_p0 = scmp.ge.s32.totalorder %s1914_s24, 2 }
 0x784   : > { %s1296_s19 = sand.u32 1, %s2467_s20   ;;  %p2469_p4 = scmp.ne.s32.totalorder %s2468_s18, 0 }
 0x785   : > { %s1297_s25 = scalar_lea.sflag [#allocation5], %s1296_s19 }
 0x786   : > { %p1608_p9 = pnand %p2470_p0, %p2469_p4 }
 0x788   : > { %1893 = dma.done.wait (!%p1608_p9), %s1297_s25, 128  }
 0x789   : > { %1895 = vsyncadd (!%p1608_p9), %s1297_s25, 4294967168  ;;  %s1306_s10 = scalar_lea.sflag [#allocation13], %s1296_s19 }
 0x78a   : > { %1897 = dma.done.wait (!%p1608_p9), %s1306_s10, 512  }
 0x78b   : > { %1899 = vsyncadd (!%p1608_p9), %s1306_s10, 4294966784  ;;  %s2471_s12 = smov %s2138_s21  ;;  %p31_p5 = scmp.ge.s32.totalorder %s2138_s21, 4  }
 0x78c   : > { %s2472_s21 = smov %s1906_s22  ;;  %s2473_s22 = smov %s1910_s23 }
 0x78d   : > { %s2474_s23 = smov %s2148_s11  ;;  %s2475_s24 = smov %s2471_s12 }
 0x78e   :  { %33 = sbr.rel (!%p31_p5) target bundleno = 15 (0xf), region = 141 }
 0x795   :  { %1311 = vsyncpa [#allocation4], 1 }
 0x796   :  { %1313 = vsyncpa [#allocation4 + $0x1], 1 }
 0x797   :  { %1314 = vsyncpa [#allocation7], 1 }
 0x798   :  { %1315 = vsyncpa [#allocation10], 1 }
 0x799   :  { %1316 = vsyncpa [#allocation5], 1 }
 0x79a   :  { %1318 = vsyncpa [#allocation5 + $0x1], 1 }
 0x79b   :  { %1319 = vsyncpa [#allocation13], 1 }
 0x79c   :  { %1321 = vsyncpa [#allocation13 + $0x1], 1 }

// kernel: tpu_custom_call.1
= control target key start
LH: loop header
LB: loop body
LE: loop exit
PB: predicated region body
PF: predicated region fallthrough
CT: control target
= control target key end

     0   :  { %s2421_s0 = inlined_call_operand.hbm [shape: f32[2,8,32], index: 0, kind: input, shape index: {}]   ;;  %s2422_s1 = inlined_call_operand.hbm [shape: bf16[32,32], index: 1, kind: input, shape index: {}]   ;;  %s2423_s2 = inlined_call_operand.vmem [shape: f32[1,32], index: 2, kind: input, shape index: {}]   ;;  %s2424_s3 = inlined_call_operand.hbm [shape: bf16[32,32], index: 3, kind: input, shape index: {}]   ;;  %s2425_s4 = inlined_call_operand.vmem [shape: f32[1,32], index: 4, kind: input, shape index: {}]   ;;  %s2426_s5 = inlined_call_operand.vmem [shape: bf16[32,32], index: 5, kind: input, shape index: {}]   ;;  %s2427_s6 = inlined_call_operand.vmem [shape: f32[1,32], index: 6, kind: input, shape index: {}]   ;;  %s2428_s7 = inlined_call_operand.hbm [shape: bf16[32,32], index: 7, kind: input, shape index: {}]   ;;  %s2429_s8 = inlined_call_operand.vmem [shape: f32[1,32], index: 8, kind: input, shape index: {}]   ;;  %s2430_s9 = inlined_call_operand.vmem [shape: f32[1,32], index: 9, kind: input, shape index: {}]   ;;  %s2431_s10 = inlined_call_operand.vmem [shape: f32[1,32], index: 10, kind: input, shape index: {}]   ;;  %s2432_s11 = inlined_call_operand.hbm [shape: f32[2,8,32], index: 11, kind: output, shape index: {0}]   ;;  %s2433_s12 = inlined_call_operand.hbm [shape: f32[2,4,8,8], index: 12, kind: output, shape index: {1}]  }
   0x1   :  { %2441 = sst [smem:[#allocation21_spill]] %s2421_s0 }
   0x2   :  { %2442 = sst [smem:[#allocation22_spill]] %s2430_s9 }
   0x3   :  { %2443 = sst [smem:[#allocation23_spill]] %s2431_s10 }
   0x4   :  { %2444 = sst [smem:[#allocation24_spill]] %s2432_s11 }
   0x5   :  { %2445 = sst [smem:[#allocation25_spill]] %s2433_s12 }
   0x6   :  { %18 = vsyncpa [#allocation4], 0 }
   0x7   :  { %20 = vsyncpa [#allocation4 + $0x1], 0 }
   0x8   :  { %21 = vsyncpa [#allocation7], 0 }
   0x9   :  { %22 = vsyncpa [#allocation10], 0 }
   0xa   :  { %23 = vsyncpa [#allocation5], 0 }
   0xb   :  { %25 = vsyncpa [#allocation5 + $0x1], 0 }
   0xc   :  { %26 = vsyncpa [#allocation13], 0 }
   0xd   :  { %28 = vsyncpa [#allocation13 + $0x1], 0  ;;  %s1998_s21 = smov 0   ;;  %s2000_s22 = smov 0  }
   0xe   :  { %s2002_s23 = smov 0   ;;  %s2004_s24 = smov 0  }
   0xf LB: > { %2446 = sst [smem:[#allocation19_spill]] %s1902_s21  ;;  %s2019_s25 = sadd.s32 4294967295, %s1914_s24   ;;  %s1914_s24 = sphi %s2004_s24, %s2475_s24   ;;  %s1910_s23 = sphi %s2002_s23, %s2474_s23   ;;  %s1906_s22 = sphi %s2000_s22, %s2473_s22   ;;  %s1902_s21 = sphi %s1998_s21, %s2472_s21  }
  0x10   : > { %s1415_s26 = sadd.s32 4294967294, %s1914_s24   ;;  %p54_p0 = scmp.ne.s32.totalorder %s1906_s22, %s1902_s21 }
  0x11   : > { %p2436_p1 = scmp.eq.s32.totalorder %s2019_s25, 0  ;;  %p294_p3 = scmp.eq.s32.totalorder %s1415_s26, 1 }
  0x12   : > { %p1416_p5 = scmp.ge.s32.totalorder %s1914_s24, 1  ;;  %p327_p7 = scmp.lt.s32.totalorder %s1914_s24, 3 }
  0x13   : > { %p2028_p4 = por %p2436_p1, %p54_p0  ;;  %p2033_p6 = por %p294_p3, %p54_p0 }
  0x14   : > { %p2038_p8 = pnand %p1416_p5, %p327_p7  ;;  %s1916_s30 = smov [#allocation6]  }
  0x15   : > { %s2447_s27 = scalar_select %p2028_p4, 1, 0 }
  0x16   : > { %s2448_s28 = scalar_select %p2033_p6, 1, 0 }
  0x17   : > { %s2450_s29 = scalar_select %p2038_p8, 1, 0 }
  0x18   : > { %2449 = sst [smem:[#allocation20_spill]] %s2448_s28  ;;  %s339_s13 = sshll.u32 %s1916_s30, 4  ;;  %s2042_s13 = int_to_ptr.vmem [resolvable:$true] %s339_s13 }
  0x19   : > { %p1593_p9 = pneg %p2038_p8  ;;  %s1917_s15 = smov [#allocation8]  }
  0x1a   : > { %s355_s16 = sshll.u32 %s1917_s15, 4  ;;  %s1918_s17 = smov [#allocation9]   ;;  %s2053_s16 = int_to_ptr.vmem [resolvable:$true] %s355_s16 }
  0x1b   : > { %p2049_p11 = pnand %p1593_p9, %p2436_p1  ;;  %s2055_s18 = sshll.u32 %s1918_s17, 4  ;;  %s378_s18 = int_to_ptr.vmem [resolvable:$true] %s2055_s18 }
  0x1c   : > { %s1694_s26 = scalar_lea.hbm %s2422_s1, 256 }
  0x1d   : > { %p1695_p12 = scmp.ne.s32.totalorder %s2422_s1, %s1694_s26  ;;  %p2065_p13 = pneg %p2049_p11 }
  0x1e   : > { %p1701_p5 = scmp.lt.u32.totalorder %s1694_s26, %s2422_s1 }
  0x1f   : > { %p1697_p0 = pnand %p2065_p13, %p1695_p12 }
  0x21   : > { %p1698_p3 = pneg %p1697_p0 }
  0x23   : > { %p1703_p7 = pnand %p1701_p5, %p1698_p3 }
  0x25   : > { %1706 = shalt.err (!%p1703_p7)
}
  0x26   : > { %s1707_s28 = scalar_lea.vmem %s2042_s13, 256  ;;  %p1715_p2 = scmp.lt.s32.totalorder %s2042_s13, %s2042_s13 }
  0x27   : > { %p1708_p9 = scmp.ne.s32.totalorder %s2042_s13, %s1707_s28  ;;  %p1716_p6 = scmp.lt.s32.totalorder %s1707_s28, %s1707_s28 }
  0x29   : > { %p1710_p10 = pnand %p1708_p9, %p2065_p13  ;;  %p1717_p12 = por %p1716_p6, %p1715_p2 }
  0x2b   : > { %p1711_p1 = pneg %p1710_p10 }
  0x2d   : > { %p1718_p0 = pnand %p1717_p12, %p1711_p1 }
  0x2f   : > { %1721 = shalt.err (!%p1718_p0)
}
  0x30   : > { %s1919_s19 = smov 64   ;;  %s1920_s20 = smov 4  }
  0x31   : > { %1596 = dma.hbm_to_vmem [thread:$0]  (!%p2049_p11), %s2422_s1, 256, %s2042_s13, [#allocation7], %s1919_s19, %s1919_s19, %s1920_s20  }
  0x32   : > { %s1722_s28 = scalar_lea.hbm %s2424_s3, 256 }
  0x33   : > { %p1723_p1 = scmp.ne.s32.totalorder %s2424_s3, %s1722_s28  ;;  %p1729_p10 = scmp.lt.u32.totalorder %s1722_s28, %s2424_s3 }
  0x35   : > { %p1725_p2 = pnand %p1723_p1, %p2065_p13 }
  0x37   : > { %p1726_p6 = pneg %p1725_p2 }
  0x39   : > { %p1731_p3 = pnand %p1729_p10, %p1726_p6 }
  0x3b   : > { %1734 = shalt.err (!%p1731_p3)
}
  0x3c   : > { %s1735_s13 = scalar_lea.vmem %s2053_s16, 256  ;;  %p1743_p12 = scmp.lt.s32.totalorder %s2053_s16, %s2053_s16 }
  0x3d   : > { %p1736_p5 = scmp.ne.s32.totalorder %s2053_s16, %s1735_s13  ;;  %p1744_p0 = scmp.lt.s32.totalorder %s1735_s13, %s1735_s13 }
  0x3f   : > { %p1738_p7 = pnand %p1736_p5, %p2065_p13  ;;  %p1745_p1 = por %p1744_p0, %p1743_p12 }
  0x41   : > { %p1739_p9 = pneg %p1738_p7 }
  0x43   : > { %p1746_p2 = pnand %p1745_p1, %p1739_p9 }
  0x45   : > { %1749 = shalt.err (!%p1746_p2)
}
  0x46   : > { %1599 = dma.hbm_to_vmem [thread:$0]  (!%p2049_p11), %s2424_s3, 256, %s2053_s16, [#allocation7], %s1919_s19, %s1919_s19, %s1920_s20  }
  0x47   : > { %s1750_s26 = scalar_lea.hbm %s2428_s7, 256 }
  0x48   : > { %p1751_p6 = scmp.ne.s32.totalorder %s2428_s7, %s1750_s26  ;;  %p1757_p5 = scmp.lt.u32.totalorder %s1750_s26, %s2428_s7 }
  0x4a   : > { %p1753_p10 = pnand %p1751_p6, %p2065_p13 }
  0x4c   : > { %p1754_p3 = pneg %p1753_p10 }
  0x4e   : > { %p1759_p7 = pnand %p1757_p5, %p1754_p3 }
  0x50   : > { %1762 = shalt.err (!%p1759_p7)
}
  0x51   : > { %s1763_s13 = scalar_lea.vmem %s378_s18, 256  ;;  %p1771_p1 = scmp.lt.s32.totalorder %s378_s18, %s378_s18 }
  0x52   : > { %p1764_p9 = scmp.ne.s32.totalorder %s378_s18, %s1763_s13  ;;  %p1772_p2 = scmp.lt.s32.totalorder %s1763_s13, %s1763_s13 }
  0x54   : > { %p1766_p12 = pnand %p1764_p9, %p2065_p13  ;;  %p1773_p4 = por %p1772_p2, %p1771_p1 }
  0x56   : > { %p1767_p0 = pneg %p1766_p12 }
  0x58   : > { %p1774_p8 = pnand %p1773_p4, %p1767_p0 }
  0x5a   : > { %1777 = shalt.err (!%p1774_p8)
}
  0x5b   : > { %1602 = dma.hbm_to_vmem [thread:$0]  (!%p2049_p11), %s2428_s7, 256, %s378_s18, [#allocation10], %s1919_s19, %s1919_s19, %s1920_s20  }
  0x5c   : > { %s2138_s21 = sadd.s32 1, %s1914_s24   ;;  %s41_s10 = sadd.s32 1, %s1910_s23 }
  0x5d   : > { %s38_s14 = ssub.s32 %s1914_s24, %s2138_s21  ;;  %p48_p8 = scmp.ne.s32.totalorder %s1910_s23, %s1906_s22 }
  0x5e   : > { %p39_p4 = scmp.eq.s32.totalorder %s38_s14, 0  ;;  %p49_p13 = scmp.eq.s32.totalorder %s1914_s24, 0 }
  0x5f   : > { %p1617_p6 = scmp.lt.s32.totalorder %s1914_s24, 2  ;;  %p2453_p3 = scmp.eq.s32.totalorder %s2019_s25, 1 }
  0x60   : > { %s2148_s11 = scalar_select %p39_p4, %s1910_s23, %s41_s10  }
  0x61   : > { %p50_p10 = por %p49_p13, %p48_p8  ;;  %p2152_p5 = por %p2453_p3, %p48_p8 }
  0x62   : > { %s400_s26 = sand.u32 1, %s1910_s23   ;;  %s1422_s30 = sshll.u32 %s1914_s24, 7 }
  0x63   : > { %s1421_s18 = sshll.u32 %s400_s26, 3  ;;  %s2455_s0 = sld [smem:[#allocation21_spill]] }
  0x64   : > { %s404_s17 = scalar_lea.vmem [#allocation3], %s1421_s18  ;;  %p2163_p11 = pnand %p1617_p6, %p50_p10 }
  0x65   : > { %s411_s28 = sshll.u32 %s404_s17, 4  ;;  %s401_s16 = scalar_lea.sflag [#allocation4], %s400_s26  ;;  %s2167_s28 = int_to_ptr.vmem [resolvable:$true] %s411_s28 }
  0x66   : > { %p1780_p9 = pneg %p2163_p11 }
  0x69   : > { %s2161_s15 = scalar_lea.hbm %s2455_s0, %s1422_s30  ;;  %s1783_s30 = scalar_lea.hbm %s2455_s0, 256 }
  0x6a   : > { %s1778_s9 = scalar_lea.hbm %s2161_s15, 128  ;;  %p1784_p1 = scmp.lt.u32.totalorder %s2161_s15, %s2455_s0 }
  0x6b   : > { %p1779_p7 = scmp.ne.s32.totalorder %s2161_s15, %s1778_s9  ;;  %p1785_p2 = scmp.lt.u32.totalorder %s1783_s30, %s1778_s9 }
  0x6c   : > { %p1787_p8 = scmp.lt.u32.totalorder %s1778_s9, %s2161_s15 }
  0x6d   : > { %p1781_p12 = pnand %p1780_p9, %p1779_p7  ;;  %p1786_p4 = por %p1785_p2, %p1784_p1 }
  0x6f   : > { %p1782_p0 = pneg %p1781_p12  ;;  %p1788_p13 = por %p1787_p8, %p1786_p4 }
  0x71   : > { %p1789_p6 = pnand %p1788_p13, %p1782_p0 }
  0x73   : > { %1792 = shalt.err (!%p1789_p6)
}
  0x74   : > { %s1793_s26 = scalar_lea.vmem %s2167_s28, 128  ;;  %s1921_s20 = smov [#allocation3]  }
  0x75   : > { %p1794_p10 = scmp.ne.s32.totalorder %s2167_s28, %s1793_s26  ;;  %s1798_s17 = sshll.u32 %s1921_s20, 4  ;;  %s1799_s17 = int_to_ptr.vmem [resolvable:$false] %s1798_s17 }
  0x76   : > { %s1800_s14 = scalar_lea.vmem %s1799_s17, 256  ;;  %p1801_p12 = scmp.lt.s32.totalorder %s2167_s28, %s1799_s17 }
  0x77   : > { %p1796_p3 = pnand %p1794_p10, %p1780_p9  ;;  %p1802_p1 = scmp.lt.s32.totalorder %s1800_s14, %s1793_s26 }
  0x79   : > { %p1797_p7 = pneg %p1796_p3  ;;  %p1803_p2 = por %p1802_p1, %p1801_p12 }
  0x7b   : > { %p1804_p4 = pnand %p1803_p2, %p1797_p7 }
  0x7d   : > { %1807 = shalt.err (!%p1804_p4)
}
  0x7e   : > { %1606 = dma.hbm_to_vmem [thread:$0]  (!%p2163_p11), %s2161_s15, 128, %s2167_s28, %s401_s16  }
  0x7f   : > { %p2457_p0 = scmp.ne.s32.totalorder %s2450_s29, 0 }
  0x80   : > { %s2197_s9 = sand.u32 (!%p2457_p0), 1, %s1906_s22   ;;  %p2458_p9 = scmp.ne.s32.totalorder (!%p2457_p0), %s2447_s27, 0 }
  0x81   : > { %420 = sbr.rel (%p2457_p0) target bundleno = 1918 (0x77e), region = 64  ;;  %s1424_s10 = sshll.u32 (!%p2457_p0), %s2197_s9, 3 }
  0x82   : > { %s423_s30 = scalar_lea.sflag (!%p2457_p0), [#allocation4], %s2197_s9  ;;  %s426_s18 = scalar_lea.vmem (!%p2457_p0), [#allocation3], %s1424_s10 }
  0x88   : > { %1881 = dma.done.wait (%p2458_p9), %s423_s30, 128  }
  0x89   : > { %1883 = vsyncadd (%p2458_p9), %s423_s30, 4294967168  ;;  %p2459_p11 = scmp.eq.s32.totalorder %s2019_s25, 0 }
  0x8b   : > { %1885 = dma.done.wait (%p2459_p11), [#allocation7], 512   ;;  %p2460_p8 = pmov %p2459_p11 }
  0x8d   : > { %1887 = vsyncadd (%p2460_p8), [#allocation7], 4294966784  ;;  %p2461_p13 = pmov %p2460_p8 }
  0x8e   : > { %p2462_p6 = pmov %p2460_p8 }
  0x8f   : > { %1889 = dma.done.wait (%p2461_p13), [#allocation10], 256  }
  0x90   : > { %1891 = vsyncadd (%p2462_p6), [#allocation10], 4294967040  ;;  %v1922_v0 = vmov 0.0   ;;  %vm1923_vm0 = vmmov 0   ;;  %v1668_v1 = vld [vmem:[#allocation8] sm:$0xff]   ;;  %v1669_v2 = vld [vmem:[#allocation6] sm:$0xff]  }
  0x91   : > { %1503 = vmatprep.subr.bf16.mxu1 %v1922_v0  ;;  %1495 = vmatprep.subr.bf16.mxu0 %v1922_v0  ;;  %v1670_v3 = vld [vmem:[#allocation8 + $0x8] sm:$0xff]   ;;  %v1671_v4 = vld [vmem:[#allocation6 + $0x8] sm:$0xff]   ;;  %vm510_vm1 = vcmask 261120   ;;  %vm684_vm2 = vcmask 64512   ;;  %s1924_s13 = smov 112   ;;  %s1925_s16 = smov 120  }
  0x92   : > { %1507 = vmatprep.mubr.msk.bf16.mxu1 %vm1923_vm0, %v1922_v0  ;;  %1499 = vmatprep.mubr.msk.bf16.mxu0 %vm1923_vm0, %v1922_v0  ;;  %v2223_v5 = vld [vmem:[%s426_s18] sm:$0xff]  ;;  %v1434_v7 = vld [vmem:[%s2425_s4] ss:$0 sm:$0xff]  ;;  %s1926_s19 = smov 104   ;;  %vm747_vm3 = vcmask 1043456   ;;  %s1429_s27 = sshll.u32 %s2197_s9, 5 }
  0x93   : > { %1504 = vmatpush3.bf16.msra.mxu1 %v1668_v1  ;;  %1496 = vmatpush3.bf16.msra.mxu0 %v1669_v2  ;;  %v486_v6 = vpack.c.bf16 %v2223_v5, %v2223_v5  ;;  %v1430_v8 = vld [vmem:[%s2423_s2] ss:$0 sm:$0xff]  ;;  %v1673_v24 = vld [vmem:[%s2426_s5 + $0x8] sm:$0xff]   ;;  %s2295_s29 = scalar_lea.vmem [#allocation12], %s1429_s27  ;;  %s1927_s15 = smov 8   ;;  %vm911_vm4 = vcmask 130112  }
  0x94   : > { %1505 = vmatprep.subr.bf16.mxu1 %v1922_v0  ;;  %1497 = vmatprep.subr.bf16.mxu0 %v1922_v0  ;;  %v1672_v23 = vld [vmem:[%s2426_s5] sm:$0xff]   ;;  %s1928_s28 = smov 16   ;;  %vm1029_vm5 = vcmask 195712   ;;  %vm1147_vm6 = vcmask 261312   ;;  %s1466_s26 = sshll.u32 %s2019_s25, 9 }
  0x95   : > { %v1438_v39 = vld [vmem:[%s2427_s6] ss:$0 sm:$0xff]  ;;  %s1281_s20 = sshll.u32 %s2295_s29, 4  ;;  %s2463_s30 = sld [smem:[#allocation25_spill]]  ;;  %s2337_s20 = int_to_ptr.vmem [resolvable:$true] %s1281_s20 }
  0x96   : > { %s1255_s27 = scalar_lea.sflag [#allocation13], %s2197_s9 }
  0x97   : > { %1506 = vmatpush3.bf16.msra.mxu1 %v1670_v3  ;;  %1498 = vmatpush3.bf16.msra.mxu0 %v1671_v4 }
  0x98   : > { %1519 = vmatprep.subr.bf16.mxu1 %v1922_v0  ;;  %1511 = vmatprep.subr.bf16.mxu0 %v1922_v0 }
  0x9a   : > { %1508 = vmatmul.mubr.msk.bf16.vlgmr.msra.gmra.mrb[0].mxu1 %vm510_vm1, %v486_v6  ;;  %1500 = vmatmul.mubr.msk.bf16.vlgmr.msra.gmra.mrb[0].mxu0 %vm510_vm1, %v486_v6 }
  0x9b   : > { %1521 = vmatprep.mubr.msk.bf16.mxu1 %vm1923_vm0, %v1922_v0  ;;  %1515 = vmatprep.mubr.msk.bf16.mxu0 %vm1923_vm0, %v1922_v0  ;;  %s2335_s18 = scalar_lea.hbm %s2463_s30, %s1466_s26 }
  0x9c   : > { %1512 = vmatpush3.bf16.msra.mxu0 %v1672_v23 }
  0x9d   : > { %1513 = vmatprep.subr.bf16.mxu0 %v1922_v0 }
  0xa0   : > { %1514 = vmatpush3.bf16.msra.mxu0 %v1673_v24 }
  0xa1   : > { %1525 = vmatprep.subr.bf16.mxu0 %v1922_v0 }
  0xa3   : > { %1516 = vmatmul.mubr.msk.bf16.vlgmr.msra.gmra.mrb[4].mxu0 %vm510_vm1, %v486_v6 }
  0xa4   : > { %1527 = vmatprep.mubr.msk.bf16.mxu0 %vm1923_vm0, %v1922_v0 }
 0x16d   : > { %v611_v9 = vpop.f32.mrb[0].mxu1  ;;  %v548_v12 = vpop.f32.mrb[0].mxu0 }
 0x16e   : > { %v612_v10 = vadd.f32 %v1434_v7, %v611_v9  ;;  %v1509_v11 = vpop.f32.mrb[1].mxu1  ;;  %v549_v13 = vadd.f32 %v1430_v8, %v548_v12  ;;  %v1501_v15 = vpop.f32.mrb[1].mxu0 }
 0x16f   : > { %v614_v14 = vpop.f32.mrb[2].mxu1  ;;  %v551_v18 = vpop.f32.mrb[2].mxu0 }
 0x170   : > { %v682_v16 = vpack.c.bf16 %v612_v10, %v612_v10  ;;  %v1510_v17 = vpop.f32.mrb[3].mxu1  ;;  %v680_v19 = vmul.f32 0.35355338, %v549_v13  ;;  %v1502_v20 = vpop.f32.mrb[3].mxu0 }
 0x172   : > { %915 = vrot.lane.b32.xlu1 %v682_v16, %s1924_s13  ;;  %796 = vrot.lane.b32.xlu0 %v682_v16, %s1925_s16  ;;  %v689_v21 = vsel %vm684_vm2, %v682_v16, 0  ;;  %v681_v22 = vpack.c.bf16 %v680_v19, %v680_v19 }
 0x173   : > { %1520 = vmatpush3.bf16.xpose.msra.mxu1 %v689_v21 }
 0x174   : > { %1531 = vmatprep.subr.bf16.mxu1 %v1922_v0 }
 0x176   : > { %913 = vrot.lane.b32.xlu1 %v681_v22, %s1924_s13  ;;  %793 = vrot.lane.b32.xlu0 %v681_v22, %s1925_s16  ;;  %v674_v40 = vpop.f32.mrb[4].mxu0 }
 0x177   : > { %v675_v41 = vadd.f32 %v1438_v39, %v674_v40  ;;  %v1517_v42 = vpop.f32.mrb[5].mxu0 }
 0x178   : > { %v677_v43 = vpop.f32.mrb[6].mxu0 }
 0x179   : > { %v683_v44 = vpack.c.bf16 %v675_v41, %v675_v41  ;;  %v1518_v45 = vpop.f32.mrb[7].mxu0 }
 0x17a   : > { %1031 = vrot.lane.b32.xlu1 %v681_v22, %s1926_s19  ;;  %1033 = vrot.lane.b32.xlu0 %v682_v16, %s1926_s19 }
 0x17b   : > { %1522 = vmatmul.mubr.msk.bf16.vlgmr.msra.gmra.mrb[4].mxu1 %vm684_vm2, %v681_v22  ;;  %v749_v46 = vsel %vm747_vm3, %v683_v44, 0 }
 0x17c   : > { %1533 = vmatprep.mubr.msk.bf16.mxu1 %vm1923_vm0, %v1922_v0  ;;  %1526 = vmatpush3.bf16.msra.mxu0 %v749_v46 }
 0x17d   : > { %1537 = vmatprep.subr.bf16.mxu0 %v1922_v0 }
 0x1e4   : > { %v797_v25 = vpop.permute.xlu0 %796  ;;  %v916_v27 = vpop.permute.xlu1 %915 }
 0x1e5   : > { %v802_v26 = vsel %vm684_vm2, %v797_v25, 0  ;;  %v921_v29 = vsel %vm684_vm2, %v916_v27, 0 }
 0x1e6   : > { %1532 = vmatpush3.bf16.xpose.msra.mxu1 %v802_v26 }
 0x1e7   : > { %1543 = vmatprep.subr.bf16.mxu1 %v1922_v0 }
 0x1e8   : > { %v794_v28 = vpop.permute.xlu0 %793  ;;  %v914_v31 = vpop.permute.xlu1 %913 }
 0x1ec   : > { %v1034_v30 = vpop.permute.xlu0 %1033  ;;  %v1032_v33 = vpop.permute.xlu1 %1031 }
 0x1ed   : > { %1534 = vmatmul.mubr.msk.bf16.vlgmr.msra.gmra.mrb[8].mxu1 %vm684_vm2, %v794_v28  ;;  %v1039_v32 = vsel %vm684_vm2, %v1034_v30, 0 }
 0x1ee   : > { %1544 = vmatpush3.bf16.xpose.msra.mxu1 %v921_v29  ;;  %1545 = vmatprep.mubr.msk.bf16.mxu1 %vm1923_vm0, %v1922_v0 }
 0x1ef   : > { %1555 = vmatprep.subr.bf16.mxu1 %v1922_v0 }
 0x1f5   : > { %1546 = vmatmul.mubr.msk.bf16.vlgmr.msra.gmra.mrb[12].mxu1 %vm684_vm2, %v914_v31 }
 0x1f6   : > { %1556 = vmatpush3.bf16.xpose.msra.mxu1 %v1039_v32  ;;  %1557 = vmatprep.mubr.msk.bf16.mxu1 %vm1923_vm0, %v1922_v0 }
 0x1f7   : > { %1567 = vmatprep.subr.bf16.mxu1 %v1922_v0 }
 0x1fd   : > { %1558 = vmatmul.mubr.msk.bf16.vlgmr.msra.gmra.mrb[16].mxu1 %vm684_vm2, %v1032_v33 }
 0x1fe   : > { %1571 = vmatprep.mubr.msk.bf16.mxu1 %vm1923_vm0, %v1922_v0 }
 0x24e   : > { %v725_v34 = vpop.f32.mrb[4].mxu1 }
 0x24f   : > { %v1523_v35 = vpop.f32.mrb[5].mxu1  ;;  %v731_v36 = vsel %vm684_vm2, %v725_v34, -inf }
 0x250   : > { %732 = vmax.xlane.f32.xlu0 %v731_v36  ;;  %v728_v37 = vpop.f32.mrb[6].mxu1 }
 0x251   : > { %v1524_v38 = vpop.f32.mrb[7].mxu1 }
 0x2c0   : > { %v838_v47 = vpop.f32.mrb[8].mxu1 }
 0x2c1   : > { %v1535_v48 = vpop.f32.mrb[9].mxu1  ;;  %v844_v49 = vsel %vm684_vm2, %v838_v47, -inf }
 0x2c2   : > { %845 = vmax.xlane.f32.xlu1 %v844_v49  ;;  %v841_v50 = vpop.f32.mrb[10].mxu1 }
 0x2c3   : > { %v1536_v51 = vpop.f32.mrb[11].mxu1  ;;  %v1674_v50 = vld [vmem:[#allocation9] sm:$0xff]  }
 0x2c4   : > { %1568 = vmatpush3.bf16.msra.mxu1 %v1674_v50  ;;  %v1675_v51 = vld [vmem:[#allocation9 + $0x8] sm:$0xff]  }
 0x2c5   : > { %1569 = vmatprep.subr.bf16.mxu1 %v1922_v0 }
 0x2c8   : > { %v957_v52 = vpop.f32.mrb[12].mxu1  ;;  %1570 = vmatpush3.bf16.msra.mxu1 %v1675_v51 }
 0x2c9   : > { %v1547_v53 = vpop.f32.mrb[13].mxu1  ;;  %v963_v54 = vsel %vm684_vm2, %v957_v52, -inf }
 0x2ca   : > { %964 = vmax.xlane.f32.xlu0 %v963_v54  ;;  %v960_v55 = vpop.f32.mrb[14].mxu1 }
 0x2cb   : > { %v1548_v56 = vpop.f32.mrb[15].mxu1 }
 0x2d0   : > { %v1075_v57 = vpop.f32.mrb[16].mxu1 }
 0x2d1   : > { %v1559_v58 = vpop.f32.mrb[17].mxu1  ;;  %v1081_v59 = vsel %vm684_vm2, %v1075_v57, -inf }
 0x2d2   : > { %1082 = vmax.xlane.f32.xlu0 %v1081_v59  ;;  %v1078_v60 = vpop.f32.mrb[18].mxu1 }
 0x2d3   : > { %v1560_v61 = vpop.f32.mrb[19].mxu1 }
 0x2dd   : > { %v733_v62 = vpop.xlane.xlu0 %732 }
 0x2de   : > { %v734_v63 = vsub.f32 %v725_v34, %v733_v62 }
 0x2e0   : > { %v735_v1 = vmul.f32 1.442695, %v734_v63 }
 0x2e2   : > { %1676 = vpow2.f32 %v735_v1  ;;  %v1453_v1 = vld [vmem:[%s2429_s8] ss:$0 sm:$0xff] }
 0x2ec   : > { %v1677_v2 = vpop.eup %1676 }
 0x2ed   : > { %v737_v3 = vsel %vm684_vm2, %v1677_v2, 0.0 }
 0x2ee   : > { %738 = vadd.xlane.f32.xlu1 %v737_v3 }
 0x2ff   : > { %859 = vrot.lane.b32.xlu1 %v683_v44, %s1925_s16 }
 0x34f   : > { %v846_v4 = vpop.xlane.xlu1 %845 }
 0x350   : > { %v847_v6 = vsub.f32 %v838_v47, %v846_v4 }
 0x352   : > { %v848_v7 = vmul.f32 1.442695, %v847_v6 }
 0x354   : > { %1678 = vpow2.f32 %v848_v7 }
 0x357   : > { %v965_v8 = vpop.xlane.xlu0 %964 }
 0x358   : > { %v966_v9 = vsub.f32 %v957_v52, %v965_v8 }
 0x35a   : > { %v967_v10 = vmul.f32 1.442695, %v966_v9 }
 0x35c   : > { %1680 = vpow2.f32 %v967_v10 }
 0x35e   : > { %v1679_v11 = vpop.eup %1678 }
 0x35f   : > { %v1083_v12 = vpop.xlane.xlu0 %1082  ;;  %v850_v13 = vsel %vm684_vm2, %v1679_v11, 0.0 }
 0x360   : > { %v1084_v14 = vsub.f32 %v1075_v57, %v1083_v12  ;;  %851 = vadd.xlane.f32.xlu0 %v850_v13 }
 0x362   : > { %v1085_v15 = vmul.f32 1.442695, %v1084_v14 }
 0x364   : > { %1682 = vpow2.f32 %v1085_v15 }
 0x366   : > { %v1681_v16 = vpop.eup %1680 }
 0x367   : > { %v969_v17 = vsel %vm684_vm2, %v1681_v16, 0.0 }
 0x368   : > { %970 = vadd.xlane.f32.xlu1 %v969_v17 }
 0x36e   : > { %v1683_v18 = vpop.eup %1682 }
 0x36f   : > { %v1087_v19 = vsel %vm684_vm2, %v1683_v18, 0.0 }
 0x370   : > { %1088 = vadd.xlane.f32.xlu0 %v1087_v19 }
 0x379   : > { %1095 = vrot.lane.b32.xlu1 %v683_v44, %s1926_s19 }
 0x37b   : > { %v739_v20 = vpop.xlane.xlu1 %738 }
 0x37c   : > { %1684 = vrcp.f32 %v739_v20 }
 0x37f   : > { %v860_v22 = vpop.permute.xlu1 %859 }
 0x380   : > { %v865_v25 = vsel %vm747_vm3, %v860_v22, 0 }
 0x386   : > { %v1685_v21 = vpop.eup %1684  ;;  %977 = vrot.lane.b32.xlu0 %v683_v44, %s1924_s13  ;;  %s1929_s13 = smov 24  }
 0x387   : > { %v741_v23 = vmul.f32 %v1685_v21, %v1677_v2 }
 0x389   : > { %742 = vst.msk [vmem:[%s2295_s29] sm:$0xff] %vm684_vm2, %v741_v23  ;;  %v743_v24 = vpack.c.bf16 %v741_v23, %v741_v23 }
 0x38b   : > { %1528 = vmatmul.mubr.msk.bf16.vlgmr.msra.gmra.mrb[8].mxu0 %vm684_vm2, %v743_v24 }
 0x38c   : > { %1538 = vmatpush3.bf16.msra.mxu0 %v865_v25  ;;  %1539 = vmatprep.mubr.msk.bf16.mxu0 %vm1923_vm0, %v1922_v0 }
 0x38d   : > { %1549 = vmatprep.subr.bf16.mxu0 %v1922_v0 }
 0x3ed   : > { %v852_v26 = vpop.xlane.xlu0 %851 }
 0x3ee   : > { %1686 = vrcp.f32 %v852_v26 }
 0x3f5   : > { %v971_v27 = vpop.xlane.xlu1 %970 }
 0x3f6   : > { %1688 = vrcp.f32 %v971_v27 }
 0x3f8   : > { %v1687_v28 = vpop.eup %1686 }
 0x3f9   : > { %v854_v29 = vmul.f32 %v1687_v28, %v1679_v11  ;;  %v1096_v36 = vpop.permute.xlu1 %1095 }
 0x3fa   : > { %v1101_v38 = vsel %vm747_vm3, %v1096_v36, 0 }
 0x3fb   : > { %1445 = vst.msk [vmem:[%s2295_s29 + $0x8] sm:$0xff] %vm684_vm2, %v854_v29  ;;  %v857_v30 = vpack.c.bf16 %v854_v29, %v854_v29 }
 0x3fd   : > { %v1089_v31 = vpop.xlane.xlu0 %1088  ;;  %1540 = vmatmul.mubr.msk.bf16.vlgmr.msra.gmra.mrb[12].mxu0 %vm684_vm2, %v857_v30 }
 0x3fe   : > { %1690 = vrcp.f32 %v1089_v31  ;;  %1551 = vmatprep.mubr.msk.bf16.mxu0 %vm1923_vm0, %v1922_v0 }
 0x400   : > { %v1689_v32 = vpop.eup %1688 }
 0x401   : > { %v973_v33 = vmul.f32 %v1689_v32, %v1681_v16  ;;  %v978_v34 = vpop.permute.xlu0 %977 }
 0x402   : > { %v983_v35 = vsel %vm747_vm3, %v978_v34, 0 }
 0x403   : > { %1448 = vst.msk [vmem:[%s2295_s29 + $0x10] sm:$0xff] %vm684_vm2, %v973_v33  ;;  %1550 = vmatpush3.bf16.msra.mxu0 %v983_v35  ;;  %v976_v37 = vpack.c.bf16 %v973_v33, %v973_v33 }
 0x404   : > { %1561 = vmatprep.subr.bf16.mxu0 %v1922_v0 }
 0x406   : > { %1552 = vmatmul.mubr.msk.bf16.vlgmr.msra.gmra.mrb[16].mxu0 %vm684_vm2, %v976_v37 }
 0x407   : > { %1562 = vmatpush3.bf16.msra.mxu0 %v1101_v38  ;;  %1563 = vmatprep.mubr.msk.bf16.mxu0 %vm1923_vm0, %v1922_v0 }
 0x408   : > { %v1691_v39 = vpop.eup %1690 }
 0x409   : > { %v1091_v40 = vmul.f32 %v1691_v39, %v1683_v18 }
 0x40b   : > { %1451 = vst.msk [vmem:[%s2295_s29 + $0x18] sm:$0xff] %vm684_vm2, %v1091_v40  ;;  %v1094_v41 = vpack.c.bf16 %v1091_v40, %v1091_v40 }
 0x40e   : > { %1564 = vmatmul.mubr.msk.bf16.vlgmr.msra.gmra.mrb[20].mxu0 %vm684_vm2, %v1094_v41 }
 0x45e   : > { %v785_v42 = vpop.f32.mrb[8].mxu0 }
 0x45f   : > { %791 = vst.msk [vmem:[#allocation2] sm:$0xff] %vm684_vm2, %v785_v42  ;;  %v1529_v43 = vpop.f32.mrb[9].mxu0 }
 0x460   : > { %v788_v44 = vpop.f32.mrb[10].mxu0 }
 0x461   : > { %v1530_v45 = vpop.f32.mrb[11].mxu0 }
 0x4d0   : > { %v901_v46 = vpop.f32.mrb[12].mxu0 }
 0x4d1   : > { %908 = vrot.lane.b32.xlu1 %v901_v46, %s1927_s15  ;;  %v1541_v47 = vpop.f32.mrb[13].mxu0 }
 0x4d2   : > { %v904_v48 = vpop.f32.mrb[14].mxu0 }
 0x4d3   : > { %v1542_v49 = vpop.f32.mrb[15].mxu0 }
 0x4d9   : > { %v1019_v52 = vpop.f32.mrb[16].mxu0 }
 0x4da   : > { %1026 = vrot.lane.b32.xlu0 %v1019_v52, %s1928_s28  ;;  %v1553_v53 = vpop.f32.mrb[17].mxu0  ;;  %s1808_s28 = scalar_lea.vmem %s2337_s20, 512 }
 0x4db   : > { %v1022_v54 = vpop.f32.mrb[18].mxu0  ;;  %p1809_p10 = scmp.ne.s32.totalorder %s2337_s20, %s1808_s28 }
 0x4dc   : > { %v1554_v55 = vpop.f32.mrb[19].mxu0 }
 0x4dd   : > { %p1810_p3 = pnand %p1809_p10, %p2152_p5 }
 0x4df   : > { %p1811_p7 = pneg %p1810_p3 }
 0x4e1   : > { %v1137_v56 = vpop.f32.mrb[20].mxu0 }
 0x4e2   : > { %1144 = vrot.lane.b32.xlu1 %v1137_v56, %s1929_s13  ;;  %v1565_v57 = vpop.f32.mrb[21].mxu0  ;;  %s1930_s13 = smov [#allocation12]  }
 0x4e3   : > { %v1140_v58 = vpop.f32.mrb[22].mxu0  ;;  %s1812_s16 = sshll.u32 %s1930_s13, 4  ;;  %s1813_s16 = int_to_ptr.vmem [resolvable:$false] %s1812_s16 }
 0x4e4   : > { %v1566_v59 = vpop.f32.mrb[23].mxu0  ;;  %s1814_s29 = scalar_lea.vmem %s1813_s16, 1024  ;;  %p1815_p12 = scmp.lt.s32.totalorder %s2337_s20, %s1813_s16 }
 0x4e5   : > { %p1816_p1 = scmp.lt.s32.totalorder %s1814_s29, %s1808_s28 }
 0x4e7   : > { %p1817_p2 = por %p1816_p1, %p1815_p12 }
 0x4e9   : > { %p1818_p4 = pnand %p1817_p2, %p1811_p7 }
 0x543   : > { %v909_v60 = vpop.permute.xlu1 %908 }
 0x544   : > { %912 = vst.msk [vmem:[#allocation2] sm:$0xff] %vm911_vm4, %v909_v60 }
 0x54c   : > { %v1027_v61 = vpop.permute.xlu0 %1026 }
 0x54d   : > { %1030 = vst.msk [vmem:[#allocation2] sm:$0xff] %vm1029_vm5, %v1027_v61 }
 0x554   : > { %v1145_v0 = vpop.permute.xlu1 %1144 }
 0x555   : > { %1148 = vst.msk [vmem:[#allocation2] sm:$0xff] %vm1147_vm6, %v1145_v0 }
 0x55c   : > { %v1149_v62 = vld [vmem:[#allocation2] sm:$0xff] }
 0x55d   : > { %v1150_v63 = vpack.c.bf16 %v1149_v62, %v1149_v62 }
 0x55f   : > { %1572 = vmatmul.mubr.msk.bf16.vlgmr.msra.gmra.mrb[20].mxu1 %vm510_vm1, %v1150_v63 }
 0x632   : > { %v1211_v2 = vpop.f32.mrb[20].mxu1 }
 0x633   : > { %v1212_v3 = vadd.f32 %v1453_v1, %v1211_v2  ;;  %v1573_v4 = vpop.f32.mrb[21].mxu1 }
 0x634   : > { %v1214_v6 = vpop.f32.mrb[22].mxu1 }
 0x635   : > { %v1574_v7 = vpop.f32.mrb[23].mxu1  ;;  %v1217_v8 = vadd.f32 %v1212_v3, %v2223_v5 }
 0x637   : > { %v1218_v9 = vsel %vm510_vm1, %v1217_v8, 0.0 }
 0x638   : > { %1219 = vadd.xlane.f32.xlu0 %v1218_v9 }
 0x6c5   : > { %v1220_v10 = vpop.xlane.xlu0 %1219 }
 0x6c6   : > { %v1222_v11 = vmul.f32 0.03125, %v1220_v10 }
 0x6c8   : > { %v1223_v12 = vsub.f32 %v1217_v8, %v1222_v11 }
 0x6ca   : > { %v1224_v13 = vmul.f32 %v1223_v12, %v1223_v12 }
 0x6cc   : > { %v1225_v14 = vsel %vm510_vm1, %v1224_v13, 0.0 }
 0x6cd   : > { %1226 = vadd.xlane.f32.xlu1 %v1225_v14 }
 0x6ce   : > { %1821 = shalt.err (!%p1818_p4)
}
 0x6cf   : > { %s1822_s19 = scalar_lea.hbm %s2335_s18, 512  ;;  %s1826_s14 = scalar_lea.hbm %s2463_s30, 1024 }
 0x6d0   : > { %p1823_p0 = scmp.ne.s32.totalorder %s2335_s18, %s1822_s19  ;;  %p1827_p8 = scmp.lt.u32.totalorder %s2335_s18, %s2463_s30 }
 0x6d1   : > { %p1828_p13 = scmp.lt.u32.totalorder %s1826_s14, %s1822_s19  ;;  %p1830_p10 = scmp.lt.u32.totalorder %s1822_s19, %s2335_s18 }
 0x6d2   : > { %p1824_p9 = pnand %p1823_p0, %p2152_p5 }
 0x6d3   : > { %p1829_p6 = por %p1828_p13, %p1827_p8 }
 0x6d4   : > { %p1825_p11 = pneg %p1824_p9 }
 0x6d5   : > { %p1831_p3 = por %p1830_p10, %p1829_p6 }
 0x6d7   : > { %p1832_p7 = pnand %p1831_p3, %p1825_p11 }
 0x6d9   : > { %1835 = shalt.err (!%p1832_p7)
}
 0x6da   : > { %s1931_s28 = smov 128   ;;  %s2464_s26 = sld [smem:[#allocation22_spill]] }
 0x6db   : > { %1590 = dma.vmem_to_hbm [thread:$0]  (%p2152_p5), %s2337_s20, 512, %s2335_s18, %s1255_s27, %s1931_s28, %s1931_s28, %s1927_s15  }
 0x6dc   : > { %s2465_s13 = sld [smem:[#allocation23_spill]]  ;;  %s1461_s16 = sshll.u32 %s2019_s25, 7 }
 0x6dd   : > { %s476_s0 = scalar_lea.vmem [#allocation11], %s1424_s10  ;;  %s2466_s27 = sld [smem:[#allocation24_spill]] }
 0x6de   : > { %s1268_s15 = sshll.u32 %s476_s0, 4  ;;  %s1250_s29 = scalar_lea.sflag [#allocation5], %s2197_s9  ;;  %s2378_s15 = int_to_ptr.vmem [resolvable:$true] %s1268_s15 }
 0x6df   : > { %s1836_s19 = scalar_lea.vmem %s2378_s15, 128  ;;  %s1932_s25 = smov [#allocation11]  }
 0x6e0   : > { %v1457_v18 = vld [vmem:[%s2464_s26] ss:$0 sm:$0xff]  ;;  %p1837_p12 = scmp.ne.s32.totalorder %s2378_s15, %s1836_s19  ;;  %s1840_s10 = sshll.u32 %s1932_s25, 4  ;;  %s1841_s10 = int_to_ptr.vmem [resolvable:$false] %s1840_s10 }
 0x6e1   : > { %s1842_s26 = scalar_lea.vmem %s1841_s10, 256  ;;  %p1843_p4 = scmp.lt.s32.totalorder %s2378_s15, %s1841_s10 }
 0x6e2   : > { %v1458_v20 = vld [vmem:[%s2465_s13] ss:$0 sm:$0xff]  ;;  %p1838_p1 = pnand %p1837_p12, %p2152_p5  ;;  %p1844_p0 = scmp.lt.s32.totalorder %s1842_s26, %s1836_s19 }
 0x6e3   : > { %s2376_s28 = scalar_lea.hbm %s2466_s27, %s1461_s16 }
 0x6e4   : > { %p1839_p2 = pneg %p1838_p1  ;;  %p1845_p9 = por %p1844_p0, %p1843_p4 }
 0x6e6   : > { %p1846_p11 = pnand %p1845_p9, %p1839_p2 }
 0x75a   : > { %v1227_v5 = vpop.xlane.xlu1 %1226 }
 0x75b   : > { %v1228_v15 = vmul.f32 0.03125, %v1227_v5 }
 0x75d   : > { %v1229_v16 = vadd.f32 1e-05, %v1228_v15 }
 0x75f   : > { %1692 = vrsqrt.f32 %v1229_v16 }
 0x769   : > { %v1693_v17 = vpop.eup %1692 }
 0x76a   : > { %v1231_v19 = vmul.f32 %v1693_v17, %v1223_v12 }
 0x76c   : > { %v1239_v21 = vmul.f32 %v1457_v18, %v1231_v19 }
 0x76e   : > { %v1247_v22 = vadd.f32 %v1458_v20, %v1239_v21 }
 0x770   : > { %1248 = vst.msk [vmem:[%s476_s0] sm:$0xff] %vm510_vm1, %v1247_v22 }
 0x771   : > { %1849 = shalt.err (!%p1846_p11)
}
 0x772   : > { %s1850_s0 = scalar_lea.hbm %s2376_s28, 128  ;;  %s1854_s14 = scalar_lea.hbm %s2466_s27, 256 }
 0x773   : > { %p1851_p8 = scmp.ne.s32.totalorder %s2376_s28, %s1850_s0  ;;  %p1855_p10 = scmp.lt.u32.totalorder %s2376_s28, %s2466_s27 }
 0x774   : > { %p1856_p3 = scmp.lt.u32.totalorder %s1854_s14, %s1850_s0  ;;  %p1858_p12 = scmp.lt.u32.totalorder %s1850_s0, %s2376_s28 }
 0x775   : > { %p1852_p13 = pnand %p1851_p8, %p2152_p5 }
 0x776   : > { %p1857_p7 = por %p1856_p3, %p1855_p10 }
 0x777   : > { %p1853_p6 = pneg %p1852_p13 }
 0x778   : > { %p1859_p1 = por %p1858_p12, %p1857_p7 }
 0x77a   : > { %p1860_p2 = pnand %p1859_p1, %p1853_p6 }
 0x77c   : > { %1863 = shalt.err (!%p1860_p2)
}
 0x77d   : > { %1589 = dma.vmem_to_hbm [thread:$0]  (%p2152_p5), %s2378_s15, 128, %s2376_s28, %s1250_s29  }
 0x77e PF: > { %s2467_s20 = sld [smem:[#allocation19_spill]]  ;;  %s2468_s18 = sld [smem:[#allocation20_spill]] }
 0x77f   : > { %p2470_p0 = scmp.ge.s32.totalorder %s1914_s24, 2 }
 0x784   : > { %s1296_s19 = sand.u32 1, %s2467_s20   ;;  %p2469_p4 = scmp.ne.s32.totalorder %s2468_s18, 0 }
 0x785   : > { %s1297_s25 = scalar_lea.sflag [#allocation5], %s1296_s19 }
 0x786   : > { %p1608_p9 = pnand %p2470_p0, %p2469_p4 }
 0x788   : > { %1893 = dma.done.wait (!%p1608_p9), %s1297_s25, 128  }
 0x789   : > { %1895 = vsyncadd (!%p1608_p9), %s1297_s25, 4294967168  ;;  %s1306_s10 = scalar_lea.sflag [#allocation13], %s1296_s19 }
 0x78a   : > { %1897 = dma.done.wait (!%p1608_p9), %s1306_s10, 512  }
 0x78b   : > { %1899 = vsyncadd (!%p1608_p9), %s1306_s10, 4294966784  ;;  %s2471_s12 = smov %s2138_s21  ;;  %p31_p5 = scmp.ge.s32.totalorder %s2138_s21, 4  }
 0x78c   : > { %s2472_s21 = smov %s1906_s22  ;;  %s2473_s22 = smov %s1910_s23 }
 0x78d   : > { %s2474_s23 = smov %s2148_s11  ;;  %s2475_s24 = smov %s2471_s12 }
 0x78e   :  { %33 = sbr.rel (!%p31_p5) target bundleno = 15 (0xf), region = 141 }
 0x795   :  { %1311 = vsyncpa [#allocation4], 1 }
 0x796   :  { %1313 = vsyncpa [#allocation4 + $0x1], 1 }
 0x797   :  { %1314 = vsyncpa [#allocation7], 1 }
 0x798   :  { %1315 = vsyncpa [#allocation10], 1 }
 0x799   :  { %1316 = vsyncpa [#allocation5], 1 }
 0x79a   :  { %1318 = vsyncpa [#allocation5 + $0x1], 1 }
 0x79b   :  { %1319 = vsyncpa [#allocation13], 1 }
 0x79c   :  { %1321 = vsyncpa [#allocation13 + $0x1], 1 }

</bundles_post_ra>
